<compile_context>
chip_gen: v7x
topology: tpu7x:2x2x1
jax: 0.10.0
libtpu: 0.0.40
codegen_flags: <defaults>
</compile_context>

<pallas_src>
import jax
import jax.numpy as jnp
from jax import lax
from jax.experimental import pallas as pl
from jax.experimental.pallas import tpu as pltpu

# ------------------------- configuration (small) -------------------------
IMG_SIZE = 16
PATCH = 4
IN_CH = 4
LATENT = 64                        # latent_dim
NUM_HEADS = max(1, LATENT // 64)   # attention_kwargs default: latent_dim // 64
HEAD_DIM = LATENT // NUM_HEADS
FF_DIM = int(LATENT * 4.0)         # feedforward_dim_ratio = 4.0
NUM_LAYERS = 2                     # small instead of 12
OUTPUT_DIM = 32                    # output_dim (exercise the output projection)
P = (IMG_SIZE // PATCH) ** 2       # num_patches = 16
T = P + 1                          # +1 head (CLS) token = 17
T_PAD = 24                         # sublane-aligned (multiple of 8) token count
CPP = IN_CH * PATCH * PATCH        # flattened patch size = 64
LN_EPS = 1e-5                      # torch.nn.LayerNorm default


def _layernorm(x, g, b):
    # f32 statistics; rsqrt lowers to the EUP.
    mu = jnp.mean(x, axis=-1, keepdims=True)
    var = jnp.mean((x - mu) ** 2, axis=-1, keepdims=True)
    return (x - mu) * lax.rsqrt(var + LN_EPS) * g + b


def _rep_spec(shape):
    # full-extent block, same block for every grid step (fetched once)
    nd = len(shape)
    return pl.BlockSpec(shape, lambda b, _n=nd: (0,) * _n)


# ------------------------------ wrapper / kernel ---------------------------
def vit_encoder_forward(img, params):
    B = img.shape[0]
    hp = IMG_SIZE // PATCH

    # ---- XLA-side glue (tiny, once per call) ------------------------------
    # im2col: NCHW -> (B, P, C*p*p) flattened in (C, ph, pw) order, matching a
    # flattened Conv2d(k=stride=patch) weight of shape (C*p*p, D).
    xp = img.reshape(B, IN_CH, hp, PATCH, hp, PATCH)
    xp = xp.transpose(0, 2, 4, 1, 3, 5).reshape(B, P, CPP)
    # Sublane-padded per-image token layout: row 0 = CLS slot (zeros -> zero
    # contribution from the embedding matmul), rows 1..P = patches, rest pad.
    xp_pad = jnp.zeros((B, T_PAD, CPP), jnp.bfloat16)
    xp_pad = xp_pad.at[:, 1:1 + P, :].set(xp.astype(jnp.bfloat16))
    # Fused additive embedding: row 0 = cls + pos[0]; rows 1..P = conv bias +
    # pos[1:]; padded rows = 0.  One matmul + one add builds the token block.
    emb_add = jnp.zeros((T_PAD, LATENT), jnp.float32)
    emb_add = emb_add.at[0:1, :].set(params["cls"] + params["pos"][0:1, :])
    emb_add = emb_add.at[1:1 + P, :].set(params["b_patch"] + params["pos"][1:, :])

    scale = 1.0 / (HEAD_DIM ** 0.5)

    def kernel(xp_ref, wp_ref, emb_ref,
               g1_ref, be1_ref, wq_ref, bq_ref, wk_ref, bk_ref, wv_ref, bv_ref,
               wo_ref, bo_ref, g2_ref, be2_ref, w1_ref, b1_ref, w2_ref, b2_ref,
               gf_ref, bfh_ref, wout_ref, o_ref):
        # ---- 1. patch embedding + CLS + pos-enc (one matmul + one add) ----
        x0 = jnp.dot(xp_ref[0], wp_ref[...],
                     preferred_element_type=jnp.float32) + emb_ref[...]   # (T_PAD, D)

        # additive mask for padded key columns (padded rows never feed valid
        # rows, so only keys need masking)
        col = lax.broadcasted_iota(jnp.int32, (1, T_PAD), 1)
        neg_mask = jnp.where(col < T, jnp.float32(0.0), jnp.float32(-1e30))

        def attend(q, k, v):
            # per-head attention; with NUM_HEADS == 1 the slices are no-ops
            outs = []
            for hh in range(NUM_HEADS):
                sl = slice(hh * HEAD_DIM, (hh + 1) * HEAD_DIM)
                s = lax.dot_general(q[:, sl], k[:, sl],
                                    (((1,), (1,)), ((), ())),
                                    preferred_element_type=jnp.float32) * scale
                s = s + neg_mask
                s = s - jnp.max(s, axis=-1, keepdims=True)
                e = jnp.exp(s)
                p = e * pl.reciprocal(jnp.sum(e, axis=-1, keepdims=True),
                                      approx=True)
                outs.append(jnp.dot(p.astype(jnp.bfloat16), v[:, sl],
                                    preferred_element_type=jnp.float32))
            return outs[0] if NUM_HEADS == 1 else jnp.concatenate(outs, axis=-1)

        # ---- 2. pre-norm transformer layers (weights stacked on axis 0) ----
        def layer_body(l, xc):
            # token mixing: LN -> Q/K/V (lane-aligned) -> softmax -> out proj
            h = _layernorm(xc, g1_ref[l], be1_ref[l]).astype(jnp.bfloat16)
            q = (jnp.dot(h, wq_ref[l], preferred_element_type=jnp.float32)
                 + bq_ref[l]).astype(jnp.bfloat16)
            k = (jnp.dot(h, wk_ref[l], preferred_element_type=jnp.float32)
                 + bk_ref[l]).astype(jnp.bfloat16)
            v = (jnp.dot(h, wv_ref[l], preferred_element_type=jnp.float32)
                 + bv_ref[l]).astype(jnp.bfloat16)
            attn = attend(q, k, v)
            attn = jnp.dot(attn.astype(jnp.bfloat16), wo_ref[l],
                           preferred_element_type=jnp.float32) + bo_ref[l]
            xc = xc + attn

            # channel mixing: LN -> GELU MLP
            h2 = _layernorm(xc, g2_ref[l], be2_ref[l]).astype(jnp.bfloat16)
            m = jnp.dot(h2, w1_ref[l],
                        preferred_element_type=jnp.float32) + b1_ref[l]
            # TODO(synk): torch nn.GELU default is exact erf; tanh approximation used here.
            m = jax.nn.gelu(m, approximate=True)
            m = jnp.dot(m.astype(jnp.bfloat16), w2_ref[l],
                        preferred_element_type=jnp.float32) + b2_ref[l]
            return xc + m

        xt = lax.fori_loop(0, NUM_LAYERS, layer_body, x0, unroll=True)

        # ---- 3. head: final LN on the CLS row + output projection ----------
        hrow = _layernorm(xt[0:1, :], gf_ref[...], bfh_ref[...])
        o_ref[0] = jnp.dot(hrow.astype(jnp.bfloat16), wout_ref[...],
                           preferred_element_type=jnp.float32)

    args = (xp_pad, params["w_patch"], emb_add,
            params["g1"], params["be1"],
            params["wq"], params["bq"], params["wk"], params["bk"],
            params["wv"], params["bv"], params["wo"], params["bo"],
            params["g2"], params["be2"], params["w1"], params["b1"],
            params["w2"], params["b2"], params["gf"], params["bf"],
            params["w_out"])

    in_specs = ([pl.BlockSpec((1, T_PAD, CPP), lambda b: (b, 0, 0))]
                + [_rep_spec(a.shape) for a in args[1:]])

    out = pl.pallas_call(
        kernel,
        out_shape=jax.ShapeDtypeStruct((B, 1, OUTPUT_DIM), jnp.float32),
        grid=(B,),
        in_specs=in_specs,
        out_specs=pl.BlockSpec((1, 1, OUTPUT_DIM), lambda b: (b, 0, 0)),
        compiler_params=pltpu.CompilerParams(
            dimension_semantics=("parallel",)),
    )(*args)
    return out.reshape(B, OUTPUT_DIM)


# ------------------------- deterministic params ---------------------------
def init_params(key):
    keys = jax.random.split(key, 9)

    def normal(k, shape, scale=0.02, dtype=jnp.float32):
        return (scale * jax.random.normal(k, shape)).astype(dtype)

    L = NUM_LAYERS
    params = {
        # patch embedding (Conv2d weight flattened + transposed), bf16 for MXU
        "w_patch": normal(keys[0], (CPP, LATENT), dtype=jnp.bfloat16),
        "b_patch": jnp.zeros((1, LATENT), jnp.float32),
        "cls": jnp.zeros((1, LATENT), jnp.float32),          # head token
        "pos": normal(keys[1], (T, LATENT)),                  # learnable vision pos-enc
        # pre-head LayerNorm + output projection
        "gf": jnp.ones((1, LATENT), jnp.float32),
        "bf": jnp.zeros((1, LATENT), jnp.float32),
        "w_out": ((LATENT ** -0.5)
                  * jax.random.normal(keys[2], (LATENT, OUTPUT_DIM))).astype(jnp.bfloat16),
        # stacked per-layer parameters (leading axis = layer); Q/K/V split so
        # each projection output starts at lane 0
        "g1": jnp.ones((L, 1, LATENT), jnp.float32),
        "be1": jnp.zeros((L, 1, LATENT), jnp.float32),
        "wq": normal(keys[3], (L, LATENT, LATENT), dtype=jnp.bfloat16),
        "bq": jnp.zeros((L, 1, LATENT), jnp.float32),
        "wk": normal(keys[4], (L, LATENT, LATENT), dtype=jnp.bfloat16),
        "bk": jnp.zeros((L, 1, LATENT), jnp.float32),
        "wv": normal(keys[5], (L, LATENT, LATENT), dtype=jnp.bfloat16),
        "bv": jnp.zeros((L, 1, LATENT), jnp.float32),
        "wo": normal(keys[6], (L, LATENT, LATENT), dtype=jnp.bfloat16),
        "bo": jnp.zeros((L, 1, LATENT), jnp.float32),
        "g2": jnp.ones((L, 1, LATENT), jnp.float32),
        "be2": jnp.zeros((L, 1, LATENT), jnp.float32),
        "w1": normal(keys[7], (L, LATENT, FF_DIM), dtype=jnp.bfloat16),
        "b1": jnp.zeros((L, 1, FF_DIM), jnp.float32),
        "w2": normal(keys[8], (L, FF_DIM, LATENT), dtype=jnp.bfloat16),
        "b2": jnp.zeros((L, 1, LATENT), jnp.float32),
    }
    return params


if __name__ == "__main__":
    key = jax.random.PRNGKey(0)
    pkey, xkey = jax.random.split(key)
    params = init_params(pkey)
    img = jax.random.normal(xkey, (2, IN_CH, IMG_SIZE, IMG_SIZE), dtype=jnp.float32)

    fwd = jax.jit(vit_encoder_forward)
    out = fwd(img, params)
    out = jax.block_until_ready(out)
    assert out.shape == (2, OUTPUT_DIM), out.shape
    assert bool(jnp.all(jnp.isfinite(out)))
    print("KERNEL_OK")
</pallas_src>

<mosaic_0001>
module attributes {stable_mosaic.version = 11 : i64} {
  func.func @kernel(%arg0: i32, %arg1: memref<1x24x64xbf16, #tpu.memory_space<vmem>>, %arg2: memref<64x64xbf16, #tpu.memory_space<vmem>>, %arg3: memref<24x64xf32, #tpu.memory_space<vmem>>, %arg4: memref<2x1x64xf32, #tpu.memory_space<vmem>>, %arg5: memref<2x1x64xf32, #tpu.memory_space<vmem>>, %arg6: memref<2x64x64xbf16, #tpu.memory_space<vmem>>, %arg7: memref<2x1x64xf32, #tpu.memory_space<vmem>>, %arg8: memref<2x64x64xbf16, #tpu.memory_space<vmem>>, %arg9: memref<2x1x64xf32, #tpu.memory_space<vmem>>, %arg10: memref<2x64x64xbf16, #tpu.memory_space<vmem>>, %arg11: memref<2x1x64xf32, #tpu.memory_space<vmem>>, %arg12: memref<2x64x64xbf16, #tpu.memory_space<vmem>>, %arg13: memref<2x1x64xf32, #tpu.memory_space<vmem>>, %arg14: memref<2x1x64xf32, #tpu.memory_space<vmem>>, %arg15: memref<2x1x64xf32, #tpu.memory_space<vmem>>, %arg16: memref<2x64x256xbf16, #tpu.memory_space<vmem>>, %arg17: memref<2x1x256xf32, #tpu.memory_space<vmem>>, %arg18: memref<2x256x64xbf16, #tpu.memory_space<vmem>>, %arg19: memref<2x1x64xf32, #tpu.memory_space<vmem>>, %arg20: memref<1x64xf32, #tpu.memory_space<vmem>>, %arg21: memref<1x64xf32, #tpu.memory_space<vmem>>, %arg22: memref<64x32xbf16, #tpu.memory_space<vmem>>, %arg23: memref<1x1x32xf32, #tpu.memory_space<vmem>>) attributes {dimension_semantics = [#tpu.dimension_semantics<parallel>], iteration_bounds = array<i64: 2>, scalar_prefetch = 0 : i64, scratch_operands = 0 : i64, tpu.core_type = #tpu.core_type<tc>, window_params = [{transform_indices = @transform_0, window_bounds = array<i64: 1, 24, 64>}, {pipeline_mode = #tpu.pipeline_mode<synchronous>, transform_indices = @transform_1, window_bounds = array<i64: 64, 64>}, {pipeline_mode = #tpu.pipeline_mode<synchronous>, transform_indices = @transform_2, window_bounds = array<i64: 24, 64>}, {pipeline_mode = #tpu.pipeline_mode<synchronous>, transform_indices = @transform_3, window_bounds = array<i64: 2, 1, 64>}, {pipeline_mode = #tpu.pipeline_mode<synchronous>, transform_indices = @transform_4, window_bounds = array<i64: 2, 1, 64>}, {pipeline_mode = #tpu.pipeline_mode<synchronous>, transform_indices = @transform_5, window_bounds = array<i64: 2, 64, 64>}, {pipeline_mode = #tpu.pipeline_mode<synchronous>, transform_indices = @transform_6, window_bounds = array<i64: 2, 1, 64>}, {pipeline_mode = #tpu.pipeline_mode<synchronous>, transform_indices = @transform_7, window_bounds = array<i64: 2, 64, 64>}, {pipeline_mode = #tpu.pipeline_mode<synchronous>, transform_indices = @transform_8, window_bounds = array<i64: 2, 1, 64>}, {pipeline_mode = #tpu.pipeline_mode<synchronous>, transform_indices = @transform_9, window_bounds = array<i64: 2, 64, 64>}, {pipeline_mode = #tpu.pipeline_mode<synchronous>, transform_indices = @transform_10, window_bounds = array<i64: 2, 1, 64>}, {pipeline_mode = #tpu.pipeline_mode<synchronous>, transform_indices = @transform_11, window_bounds = array<i64: 2, 64, 64>}, {pipeline_mode = #tpu.pipeline_mode<synchronous>, transform_indices = @transform_12, window_bounds = array<i64: 2, 1, 64>}, {pipeline_mode = #tpu.pipeline_mode<synchronous>, transform_indices = @transform_13, window_bounds = array<i64: 2, 1, 64>}, {pipeline_mode = #tpu.pipeline_mode<synchronous>, transform_indices = @transform_14, window_bounds = array<i64: 2, 1, 64>}, {pipeline_mode = #tpu.pipeline_mode<synchronous>, transform_indices = @transform_15, window_bounds = array<i64: 2, 64, 256>}, {pipeline_mode = #tpu.pipeline_mode<synchronous>, transform_indices = @transform_16, window_bounds = array<i64: 2, 1, 256>}, {pipeline_mode = #tpu.pipeline_mode<synchronous>, transform_indices = @transform_17, window_bounds = array<i64: 2, 256, 64>}, {pipeline_mode = #tpu.pipeline_mode<synchronous>, transform_indices = @transform_18, window_bounds = array<i64: 2, 1, 64>}, {pipeline_mode = #tpu.pipeline_mode<synchronous>, transform_indices = @transform_19, window_bounds = array<i64: 1, 64>}, {pipeline_mode = #tpu.pipeline_mode<synchronous>, transform_indices = @transform_20, window_bounds = array<i64: 1, 64>}, {pipeline_mode = #tpu.pipeline_mode<synchronous>, transform_indices = @transform_21, window_bounds = array<i64: 64, 32>}, {transform_indices = @transform_22, window_bounds = array<i64: 1, 1, 32>}]} {
    %c0 = arith.constant 0 : index
    %c0_0 = arith.constant 0 : index
    %c0_1 = arith.constant 0 : index
    %0 = vector.load %arg1[%c0, %c0_0, %c0_1] : memref<1x24x64xbf16, #tpu.memory_space<vmem>>, vector<1x24x64xbf16>
    %1 = vector.shape_cast %0 : vector<1x24x64xbf16> to vector<24x64xbf16>
    %c0_2 = arith.constant 0 : index
    %c0_3 = arith.constant 0 : index
    %2 = vector.load %arg2[%c0_2, %c0_3] : memref<64x64xbf16, #tpu.memory_space<vmem>>, vector<64x64xbf16>
    %cst = arith.constant dense<0.000000e+00> : vector<24x64xf32>
    %3 = tpu.matmul %1, %2, %cst {dimension_numbers = #tpu.dot_dimension_numbers<[1], [0], [0], [1], [0, 0, 1, 1], [], []>} : vector<24x64xbf16>, vector<64x64xbf16>, vector<24x64xf32> -> vector<24x64xf32>
    %c0_4 = arith.constant 0 : index
    %c0_5 = arith.constant 0 : index
    %4 = vector.load %arg3[%c0_4, %c0_5] : memref<24x64xf32, #tpu.memory_space<vmem>>, vector<24x64xf32>
    %5 = arith.addf %3, %4 : vector<24x64xf32>
    %6 = tpu.iota {dimensions = array<i32: 1>} : vector<1x24xi32>
    %c17_i32 = arith.constant 17 : i32
    %7 = vector.broadcast %c17_i32 : i32 to vector<1x24xi32>
    %8 = arith.cmpi slt, %6, %7 : vector<1x24xi32>
    %cst_6 = arith.constant 0.000000e+00 : f32
    %cst_7 = arith.constant -1.000000e+30 : f32
    %9 = vector.broadcast %cst_6 : f32 to vector<1x24xf32>
    %10 = vector.broadcast %cst_7 : f32 to vector<1x24xf32>
    %11 = arith.select %8, %9, %10 : vector<1x24xi1>, vector<1x24xf32>
    %c0_i32 = arith.constant 0 : i32
    %12 = arith.index_cast %c0_i32 : i32 to index
    %c0_8 = arith.constant 0 : index
    %c0_9 = arith.constant 0 : index
    %13 = vector.load %arg4[%12, %c0_8, %c0_9] : memref<2x1x64xf32, #tpu.memory_space<vmem>>, vector<1x1x64xf32>
    %14 = vector.shape_cast %13 : vector<1x1x64xf32> to vector<1x64xf32>
    %15 = arith.index_cast %c0_i32 : i32 to index
    %c0_10 = arith.constant 0 : index
    %c0_11 = arith.constant 0 : index
    %16 = vector.load %arg5[%15, %c0_10, %c0_11] : memref<2x1x64xf32, #tpu.memory_space<vmem>>, vector<1x1x64xf32>
    %17 = vector.shape_cast %16 : vector<1x1x64xf32> to vector<1x64xf32>
    %cst_12 = arith.constant dense<0.000000e+00> : vector<24xf32>
    %18 = vector.multi_reduction <add>, %5, %cst_12 [1] : vector<24x64xf32> to vector<24xf32>
    %19 = vector.shape_cast %18 : vector<24xf32> to vector<24x1xf32>
    %cst_13 = arith.constant 6.400000e+01 : f32
    %20 = vector.broadcast %cst_13 : f32 to vector<24x1xf32>
    %21 = arith.divf %19, %20 : vector<24x1xf32>
    %22 = vector.broadcast %21 : vector<24x1xf32> to vector<24x64xf32>
    %23 = arith.subf %5, %22 : vector<24x64xf32>
    %24 = arith.mulf %23, %23 : vector<24x64xf32>
    %cst_14 = arith.constant dense<0.000000e+00> : vector<24xf32>
    %25 = vector.multi_reduction <add>, %24, %cst_14 [1] : vector<24x64xf32> to vector<24xf32>
    %26 = vector.shape_cast %25 : vector<24xf32> to vector<24x1xf32>
    %cst_15 = arith.constant 6.400000e+01 : f32
    %27 = vector.broadcast %cst_15 : f32 to vector<24x1xf32>
    %28 = arith.divf %26, %27 : vector<24x1xf32>
    %29 = vector.broadcast %21 : vector<24x1xf32> to vector<24x64xf32>
    %30 = arith.subf %5, %29 : vector<24x64xf32>
    %cst_16 = arith.constant 9.99999974E-6 : f32
    %31 = vector.broadcast %cst_16 : f32 to vector<24x1xf32>
    %32 = arith.addf %28, %31 : vector<24x1xf32>
    %33 = math.rsqrt %32 : vector<24x1xf32>
    %34 = vector.broadcast %33 : vector<24x1xf32> to vector<24x64xf32>
    %35 = arith.mulf %30, %34 : vector<24x64xf32>
    %36 = vector.broadcast %14 : vector<1x64xf32> to vector<24x64xf32>
    %37 = arith.mulf %35, %36 : vector<24x64xf32>
    %38 = vector.broadcast %17 : vector<1x64xf32> to vector<24x64xf32>
    %39 = arith.addf %37, %38 : vector<24x64xf32>
    %40 = arith.truncf %39 : vector<24x64xf32> to vector<24x64xbf16>
    %41 = arith.index_cast %c0_i32 : i32 to index
    %c0_17 = arith.constant 0 : index
    %c0_18 = arith.constant 0 : index
    %42 = vector.load %arg6[%41, %c0_17, %c0_18] : memref<2x64x64xbf16, #tpu.memory_space<vmem>>, vector<1x64x64xbf16>
    %43 = vector.shape_cast %42 : vector<1x64x64xbf16> to vector<64x64xbf16>
    %cst_19 = arith.constant dense<0.000000e+00> : vector<24x64xf32>
    %44 = tpu.matmul %40, %43, %cst_19 {dimension_numbers = #tpu.dot_dimension_numbers<[1], [0], [0], [1], [0, 0, 1, 1], [], []>} : vector<24x64xbf16>, vector<64x64xbf16>, vector<24x64xf32> -> vector<24x64xf32>
    %45 = arith.index_cast %c0_i32 : i32 to index
    %c0_20 = arith.constant 0 : index
    %c0_21 = arith.constant 0 : index
    %46 = vector.load %arg7[%45, %c0_20, %c0_21] : memref<2x1x64xf32, #tpu.memory_space<vmem>>, vector<1x1x64xf32>
    %47 = vector.shape_cast %46 : vector<1x1x64xf32> to vector<1x64xf32>
    %48 = vector.broadcast %47 : vector<1x64xf32> to vector<24x64xf32>
    %49 = arith.addf %44, %48 : vector<24x64xf32>
    %50 = arith.truncf %49 : vector<24x64xf32> to vector<24x64xbf16>
    %51 = arith.index_cast %c0_i32 : i32 to index
    %c0_22 = arith.constant 0 : index
    %c0_23 = arith.constant 0 : index
    %52 = vector.load %arg8[%51, %c0_22, %c0_23] : memref<2x64x64xbf16, #tpu.memory_space<vmem>>, vector<1x64x64xbf16>
    %53 = vector.shape_cast %52 : vector<1x64x64xbf16> to vector<64x64xbf16>
    %cst_24 = arith.constant dense<0.000000e+00> : vector<24x64xf32>
    %54 = tpu.matmul %40, %53, %cst_24 {dimension_numbers = #tpu.dot_dimension_numbers<[1], [0], [0], [1], [0, 0, 1, 1], [], []>} : vector<24x64xbf16>, vector<64x64xbf16>, vector<24x64xf32> -> vector<24x64xf32>
    %55 = arith.index_cast %c0_i32 : i32 to index
    %c0_25 = arith.constant 0 : index
    %c0_26 = arith.constant 0 : index
    %56 = vector.load %arg9[%55, %c0_25, %c0_26] : memref<2x1x64xf32, #tpu.memory_space<vmem>>, vector<1x1x64xf32>
    %57 = vector.shape_cast %56 : vector<1x1x64xf32> to vector<1x64xf32>
    %58 = vector.broadcast %57 : vector<1x64xf32> to vector<24x64xf32>
    %59 = arith.addf %54, %58 : vector<24x64xf32>
    %60 = arith.truncf %59 : vector<24x64xf32> to vector<24x64xbf16>
    %61 = arith.index_cast %c0_i32 : i32 to index
    %c0_27 = arith.constant 0 : index
    %c0_28 = arith.constant 0 : index
    %62 = vector.load %arg10[%61, %c0_27, %c0_28] : memref<2x64x64xbf16, #tpu.memory_space<vmem>>, vector<1x64x64xbf16>
    %63 = vector.shape_cast %62 : vector<1x64x64xbf16> to vector<64x64xbf16>
    %cst_29 = arith.constant dense<0.000000e+00> : vector<24x64xf32>
    %64 = tpu.matmul %40, %63, %cst_29 {dimension_numbers = #tpu.dot_dimension_numbers<[1], [0], [0], [1], [0, 0, 1, 1], [], []>} : vector<24x64xbf16>, vector<64x64xbf16>, vector<24x64xf32> -> vector<24x64xf32>
    %65 = arith.index_cast %c0_i32 : i32 to index
    %c0_30 = arith.constant 0 : index
    %c0_31 = arith.constant 0 : index
    %66 = vector.load %arg11[%65, %c0_30, %c0_31] : memref<2x1x64xf32, #tpu.memory_space<vmem>>, vector<1x1x64xf32>
    %67 = vector.shape_cast %66 : vector<1x1x64xf32> to vector<1x64xf32>
    %68 = vector.broadcast %67 : vector<1x64xf32> to vector<24x64xf32>
    %69 = arith.addf %64, %68 : vector<24x64xf32>
    %70 = arith.truncf %69 : vector<24x64xf32> to vector<24x64xbf16>
    %cst_32 = arith.constant dense<0.000000e+00> : vector<24x24xf32>
    %71 = tpu.matmul %50, %60, %cst_32 {dimension_numbers = #tpu.dot_dimension_numbers<[1], [1], [0], [0], [0, 0, 1, 0], [], []>} : vector<24x64xbf16>, vector<24x64xbf16>, vector<24x24xf32> -> vector<24x24xf32>
    %cst_33 = arith.constant 1.250000e-01 : f32
    %72 = vector.broadcast %cst_33 : f32 to vector<24x24xf32>
    %73 = arith.mulf %71, %72 : vector<24x24xf32>
    %74 = vector.broadcast %11 : vector<1x24xf32> to vector<24x24xf32>
    %75 = arith.addf %73, %74 : vector<24x24xf32>
    %cst_34 = arith.constant dense<0xFF800000> : vector<24xf32>
    %76 = vector.multi_reduction <maximumf>, %75, %cst_34 [1] : vector<24x24xf32> to vector<24xf32>
    %77 = vector.shape_cast %76 : vector<24xf32> to vector<24x1xf32>
    %78 = vector.broadcast %77 : vector<24x1xf32> to vector<24x24xf32>
    %79 = arith.subf %75, %78 : vector<24x24xf32>
    %80 = math.exp %79 : vector<24x24xf32>
    %cst_35 = arith.constant dense<0.000000e+00> : vector<24xf32>
    %81 = vector.multi_reduction <add>, %80, %cst_35 [1] : vector<24x24xf32> to vector<24xf32>
    %82 = vector.shape_cast %81 : vector<24xf32> to vector<24x1xf32>
    %83 = tpu.reciprocal %82 {approx = true} : vector<24x1xf32> -> vector<24x1xf32>
    %84 = vector.broadcast %83 : vector<24x1xf32> to vector<24x24xf32>
    %85 = arith.mulf %80, %84 : vector<24x24xf32>
    %86 = arith.truncf %85 : vector<24x24xf32> to vector<24x24xbf16>
    %cst_36 = arith.constant dense<0.000000e+00> : vector<24x64xf32>
    %87 = tpu.matmul %86, %70, %cst_36 {dimension_numbers = #tpu.dot_dimension_numbers<[1], [0], [0], [1], [0, 0, 1, 1], [], []>} : vector<24x24xbf16>, vector<24x64xbf16>, vector<24x64xf32> -> vector<24x64xf32>
    %88 = arith.truncf %87 : vector<24x64xf32> to vector<24x64xbf16>
    %89 = arith.index_cast %c0_i32 : i32 to index
    %c0_37 = arith.constant 0 : index
    %c0_38 = arith.constant 0 : index
    %90 = vector.load %arg12[%89, %c0_37, %c0_38] : memref<2x64x64xbf16, #tpu.memory_space<vmem>>, vector<1x64x64xbf16>
    %91 = vector.shape_cast %90 : vector<1x64x64xbf16> to vector<64x64xbf16>
    %cst_39 = arith.constant dense<0.000000e+00> : vector<24x64xf32>
    %92 = tpu.matmul %88, %91, %cst_39 {dimension_numbers = #tpu.dot_dimension_numbers<[1], [0], [0], [1], [0, 0, 1, 1], [], []>} : vector<24x64xbf16>, vector<64x64xbf16>, vector<24x64xf32> -> vector<24x64xf32>
    %93 = arith.index_cast %c0_i32 : i32 to index
    %c0_40 = arith.constant 0 : index
    %c0_41 = arith.constant 0 : index
    %94 = vector.load %arg13[%93, %c0_40, %c0_41] : memref<2x1x64xf32, #tpu.memory_space<vmem>>, vector<1x1x64xf32>
    %95 = vector.shape_cast %94 : vector<1x1x64xf32> to vector<1x64xf32>
    %96 = vector.broadcast %95 : vector<1x64xf32> to vector<24x64xf32>
    %97 = arith.addf %92, %96 : vector<24x64xf32>
    %98 = arith.addf %5, %97 : vector<24x64xf32>
    %99 = arith.index_cast %c0_i32 : i32 to index
    %c0_42 = arith.constant 0 : index
    %c0_43 = arith.constant 0 : index
    %100 = vector.load %arg14[%99, %c0_42, %c0_43] : memref<2x1x64xf32, #tpu.memory_space<vmem>>, vector<1x1x64xf32>
    %101 = vector.shape_cast %100 : vector<1x1x64xf32> to vector<1x64xf32>
    %102 = arith.index_cast %c0_i32 : i32 to index
    %c0_44 = arith.constant 0 : index
    %c0_45 = arith.constant 0 : index
    %103 = vector.load %arg15[%102, %c0_44, %c0_45] : memref<2x1x64xf32, #tpu.memory_space<vmem>>, vector<1x1x64xf32>
    %104 = vector.shape_cast %103 : vector<1x1x64xf32> to vector<1x64xf32>
    %cst_46 = arith.constant dense<0.000000e+00> : vector<24xf32>
    %105 = vector.multi_reduction <add>, %98, %cst_46 [1] : vector<24x64xf32> to vector<24xf32>
    %106 = vector.shape_cast %105 : vector<24xf32> to vector<24x1xf32>
    %cst_47 = arith.constant 6.400000e+01 : f32
    %107 = vector.broadcast %cst_47 : f32 to vector<24x1xf32>
    %108 = arith.divf %106, %107 : vector<24x1xf32>
    %109 = vector.broadcast %108 : vector<24x1xf32> to vector<24x64xf32>
    %110 = arith.subf %98, %109 : vector<24x64xf32>
    %111 = arith.mulf %110, %110 : vector<24x64xf32>
    %cst_48 = arith.constant dense<0.000000e+00> : vector<24xf32>
    %112 = vector.multi_reduction <add>, %111, %cst_48 [1] : vector<24x64xf32> to vector<24xf32>
    %113 = vector.shape_cast %112 : vector<24xf32> to vector<24x1xf32>
    %cst_49 = arith.constant 6.400000e+01 : f32
    %114 = vector.broadcast %cst_49 : f32 to vector<24x1xf32>
    %115 = arith.divf %113, %114 : vector<24x1xf32>
    %116 = vector.broadcast %108 : vector<24x1xf32> to vector<24x64xf32>
    %117 = arith.subf %98, %116 : vector<24x64xf32>
    %cst_50 = arith.constant 9.99999974E-6 : f32
    %118 = vector.broadcast %cst_50 : f32 to vector<24x1xf32>
    %119 = arith.addf %115, %118 : vector<24x1xf32>
    %120 = math.rsqrt %119 : vector<24x1xf32>
    %121 = vector.broadcast %120 : vector<24x1xf32> to vector<24x64xf32>
    %122 = arith.mulf %117, %121 : vector<24x64xf32>
    %123 = vector.broadcast %101 : vector<1x64xf32> to vector<24x64xf32>
    %124 = arith.mulf %122, %123 : vector<24x64xf32>
    %125 = vector.broadcast %104 : vector<1x64xf32> to vector<24x64xf32>
    %126 = arith.addf %124, %125 : vector<24x64xf32>
    %127 = arith.truncf %126 : vector<24x64xf32> to vector<24x64xbf16>
    %128 = arith.index_cast %c0_i32 : i32 to index
    %c0_51 = arith.constant 0 : index
    %c0_52 = arith.constant 0 : index
    %129 = vector.load %arg16[%128, %c0_51, %c0_52] : memref<2x64x256xbf16, #tpu.memory_space<vmem>>, vector<1x64x256xbf16>
    %130 = vector.shape_cast %129 : vector<1x64x256xbf16> to vector<64x256xbf16>
    %cst_53 = arith.constant dense<0.000000e+00> : vector<24x256xf32>
    %131 = tpu.matmul %127, %130, %cst_53 {dimension_numbers = #tpu.dot_dimension_numbers<[1], [0], [0], [1], [0, 0, 1, 1], [], []>} : vector<24x64xbf16>, vector<64x256xbf16>, vector<24x256xf32> -> vector<24x256xf32>
    %132 = arith.index_cast %c0_i32 : i32 to index
    %c0_54 = arith.constant 0 : index
    %c0_55 = arith.constant 0 : index
    %133 = vector.load %arg17[%132, %c0_54, %c0_55] : memref<2x1x256xf32, #tpu.memory_space<vmem>>, vector<1x1x256xf32>
    %134 = vector.shape_cast %133 : vector<1x1x256xf32> to vector<1x256xf32>
    %135 = vector.broadcast %134 : vector<1x256xf32> to vector<24x256xf32>
    %136 = arith.addf %131, %135 : vector<24x256xf32>
    %137 = arith.mulf %136, %136 : vector<24x256xf32>
    %138 = arith.mulf %136, %137 : vector<24x256xf32>
    %cst_56 = arith.constant 4.471500e-02 : f32
    %139 = vector.broadcast %cst_56 : f32 to vector<24x256xf32>
    %140 = arith.mulf %139, %138 : vector<24x256xf32>
    %141 = arith.addf %136, %140 : vector<24x256xf32>
    %cst_57 = arith.constant 0.797884583 : f32
    %142 = vector.broadcast %cst_57 : f32 to vector<24x256xf32>
    %143 = arith.mulf %142, %141 : vector<24x256xf32>
    %144 = math.tanh %143 : vector<24x256xf32>
    %cst_58 = arith.constant 1.000000e+00 : f32
    %145 = vector.broadcast %cst_58 : f32 to vector<24x256xf32>
    %146 = arith.addf %145, %144 : vector<24x256xf32>
    %cst_59 = arith.constant 5.000000e-01 : f32
    %147 = vector.broadcast %cst_59 : f32 to vector<24x256xf32>
    %148 = arith.mulf %147, %146 : vector<24x256xf32>
    %149 = arith.mulf %136, %148 : vector<24x256xf32>
    %150 = arith.truncf %149 : vector<24x256xf32> to vector<24x256xbf16>
    %151 = arith.index_cast %c0_i32 : i32 to index
    %c0_60 = arith.constant 0 : index
    %c0_61 = arith.constant 0 : index
    %152 = vector.load %arg18[%151, %c0_60, %c0_61] : memref<2x256x64xbf16, #tpu.memory_space<vmem>>, vector<1x256x64xbf16>
    %153 = vector.shape_cast %152 : vector<1x256x64xbf16> to vector<256x64xbf16>
    %cst_62 = arith.constant dense<0.000000e+00> : vector<24x64xf32>
    %154 = tpu.matmul %150, %153, %cst_62 {dimension_numbers = #tpu.dot_dimension_numbers<[1], [0], [0], [1], [0, 0, 1, 1], [], []>} : vector<24x256xbf16>, vector<256x64xbf16>, vector<24x64xf32> -> vector<24x64xf32>
    %155 = arith.index_cast %c0_i32 : i32 to index
    %c0_63 = arith.constant 0 : index
    %c0_64 = arith.constant 0 : index
    %156 = vector.load %arg19[%155, %c0_63, %c0_64] : memref<2x1x64xf32, #tpu.memory_space<vmem>>, vector<1x1x64xf32>
    %157 = vector.shape_cast %156 : vector<1x1x64xf32> to vector<1x64xf32>
    %158 = vector.broadcast %157 : vector<1x64xf32> to vector<24x64xf32>
    %159 = arith.addf %154, %158 : vector<24x64xf32>
    %160 = arith.addf %98, %159 : vector<24x64xf32>
    %c1_i32 = arith.constant 1 : i32
    %161 = arith.index_cast %c1_i32 : i32 to index
    %c0_65 = arith.constant 0 : index
    %c0_66 = arith.constant 0 : index
    %162 = vector.load %arg4[%161, %c0_65, %c0_66] : memref<2x1x64xf32, #tpu.memory_space<vmem>>, vector<1x1x64xf32>
    %163 = vector.shape_cast %162 : vector<1x1x64xf32> to vector<1x64xf32>
    %164 = arith.index_cast %c1_i32 : i32 to index
    %c0_67 = arith.constant 0 : index
    %c0_68 = arith.constant 0 : index
    %165 = vector.load %arg5[%164, %c0_67, %c0_68] : memref<2x1x64xf32, #tpu.memory_space<vmem>>, vector<1x1x64xf32>
    %166 = vector.shape_cast %165 : vector<1x1x64xf32> to vector<1x64xf32>
    %cst_69 = arith.constant dense<0.000000e+00> : vector<24xf32>
    %167 = vector.multi_reduction <add>, %160, %cst_69 [1] : vector<24x64xf32> to vector<24xf32>
    %168 = vector.shape_cast %167 : vector<24xf32> to vector<24x1xf32>
    %cst_70 = arith.constant 6.400000e+01 : f32
    %169 = vector.broadcast %cst_70 : f32 to vector<24x1xf32>
    %170 = arith.divf %168, %169 : vector<24x1xf32>
    %171 = vector.broadcast %170 : vector<24x1xf32> to vector<24x64xf32>
    %172 = arith.subf %160, %171 : vector<24x64xf32>
    %173 = arith.mulf %172, %172 : vector<24x64xf32>
    %cst_71 = arith.constant dense<0.000000e+00> : vector<24xf32>
    %174 = vector.multi_reduction <add>, %173, %cst_71 [1] : vector<24x64xf32> to vector<24xf32>
    %175 = vector.shape_cast %174 : vector<24xf32> to vector<24x1xf32>
    %cst_72 = arith.constant 6.400000e+01 : f32
    %176 = vector.broadcast %cst_72 : f32 to vector<24x1xf32>
    %177 = arith.divf %175, %176 : vector<24x1xf32>
    %178 = vector.broadcast %170 : vector<24x1xf32> to vector<24x64xf32>
    %179 = arith.subf %160, %178 : vector<24x64xf32>
    %cst_73 = arith.constant 9.99999974E-6 : f32
    %180 = vector.broadcast %cst_73 : f32 to vector<24x1xf32>
    %181 = arith.addf %177, %180 : vector<24x1xf32>
    %182 = math.rsqrt %181 : vector<24x1xf32>
    %183 = vector.broadcast %182 : vector<24x1xf32> to vector<24x64xf32>
    %184 = arith.mulf %179, %183 : vector<24x64xf32>
    %185 = vector.broadcast %163 : vector<1x64xf32> to vector<24x64xf32>
    %186 = arith.mulf %184, %185 : vector<24x64xf32>
    %187 = vector.broadcast %166 : vector<1x64xf32> to vector<24x64xf32>
    %188 = arith.addf %186, %187 : vector<24x64xf32>
    %189 = arith.truncf %188 : vector<24x64xf32> to vector<24x64xbf16>
    %190 = arith.index_cast %c1_i32 : i32 to index
    %c0_74 = arith.constant 0 : index
    %c0_75 = arith.constant 0 : index
    %191 = vector.load %arg6[%190, %c0_74, %c0_75] : memref<2x64x64xbf16, #tpu.memory_space<vmem>>, vector<1x64x64xbf16>
    %192 = vector.shape_cast %191 : vector<1x64x64xbf16> to vector<64x64xbf16>
    %cst_76 = arith.constant dense<0.000000e+00> : vector<24x64xf32>
    %193 = tpu.matmul %189, %192, %cst_76 {dimension_numbers = #tpu.dot_dimension_numbers<[1], [0], [0], [1], [0, 0, 1, 1], [], []>} : vector<24x64xbf16>, vector<64x64xbf16>, vector<24x64xf32> -> vector<24x64xf32>
    %194 = arith.index_cast %c1_i32 : i32 to index
    %c0_77 = arith.constant 0 : index
    %c0_78 = arith.constant 0 : index
    %195 = vector.load %arg7[%194, %c0_77, %c0_78] : memref<2x1x64xf32, #tpu.memory_space<vmem>>, vector<1x1x64xf32>
    %196 = vector.shape_cast %195 : vector<1x1x64xf32> to vector<1x64xf32>
    %197 = vector.broadcast %196 : vector<1x64xf32> to vector<24x64xf32>
    %198 = arith.addf %193, %197 : vector<24x64xf32>
    %199 = arith.truncf %198 : vector<24x64xf32> to vector<24x64xbf16>
    %200 = arith.index_cast %c1_i32 : i32 to index
    %c0_79 = arith.constant 0 : index
    %c0_80 = arith.constant 0 : index
    %201 = vector.load %arg8[%200, %c0_79, %c0_80] : memref<2x64x64xbf16, #tpu.memory_space<vmem>>, vector<1x64x64xbf16>
    %202 = vector.shape_cast %201 : vector<1x64x64xbf16> to vector<64x64xbf16>
    %cst_81 = arith.constant dense<0.000000e+00> : vector<24x64xf32>
    %203 = tpu.matmul %189, %202, %cst_81 {dimension_numbers = #tpu.dot_dimension_numbers<[1], [0], [0], [1], [0, 0, 1, 1], [], []>} : vector<24x64xbf16>, vector<64x64xbf16>, vector<24x64xf32> -> vector<24x64xf32>
    %204 = arith.index_cast %c1_i32 : i32 to index
    %c0_82 = arith.constant 0 : index
    %c0_83 = arith.constant 0 : index
    %205 = vector.load %arg9[%204, %c0_82, %c0_83] : memref<2x1x64xf32, #tpu.memory_space<vmem>>, vector<1x1x64xf32>
    %206 = vector.shape_cast %205 : vector<1x1x64xf32> to vector<1x64xf32>
    %207 = vector.broadcast %206 : vector<1x64xf32> to vector<24x64xf32>
    %208 = arith.addf %203, %207 : vector<24x64xf32>
    %209 = arith.truncf %208 : vector<24x64xf32> to vector<24x64xbf16>
    %210 = arith.index_cast %c1_i32 : i32 to index
    %c0_84 = arith.constant 0 : index
    %c0_85 = arith.constant 0 : index
    %211 = vector.load %arg10[%210, %c0_84, %c0_85] : memref<2x64x64xbf16, #tpu.memory_space<vmem>>, vector<1x64x64xbf16>
    %212 = vector.shape_cast %211 : vector<1x64x64xbf16> to vector<64x64xbf16>
    %cst_86 = arith.constant dense<0.000000e+00> : vector<24x64xf32>
    %213 = tpu.matmul %189, %212, %cst_86 {dimension_numbers = #tpu.dot_dimension_numbers<[1], [0], [0], [1], [0, 0, 1, 1], [], []>} : vector<24x64xbf16>, vector<64x64xbf16>, vector<24x64xf32> -> vector<24x64xf32>
    %214 = arith.index_cast %c1_i32 : i32 to index
    %c0_87 = arith.constant 0 : index
    %c0_88 = arith.constant 0 : index
    %215 = vector.load %arg11[%214, %c0_87, %c0_88] : memref<2x1x64xf32, #tpu.memory_space<vmem>>, vector<1x1x64xf32>
    %216 = vector.shape_cast %215 : vector<1x1x64xf32> to vector<1x64xf32>
    %217 = vector.broadcast %216 : vector<1x64xf32> to vector<24x64xf32>
    %218 = arith.addf %213, %217 : vector<24x64xf32>
    %219 = arith.truncf %218 : vector<24x64xf32> to vector<24x64xbf16>
    %cst_89 = arith.constant dense<0.000000e+00> : vector<24x24xf32>
    %220 = tpu.matmul %199, %209, %cst_89 {dimension_numbers = #tpu.dot_dimension_numbers<[1], [1], [0], [0], [0, 0, 1, 0], [], []>} : vector<24x64xbf16>, vector<24x64xbf16>, vector<24x24xf32> -> vector<24x24xf32>
    %cst_90 = arith.constant 1.250000e-01 : f32
    %221 = vector.broadcast %cst_90 : f32 to vector<24x24xf32>
    %222 = arith.mulf %220, %221 : vector<24x24xf32>
    %223 = vector.broadcast %11 : vector<1x24xf32> to vector<24x24xf32>
    %224 = arith.addf %222, %223 : vector<24x24xf32>
    %cst_91 = arith.constant dense<0xFF800000> : vector<24xf32>
    %225 = vector.multi_reduction <maximumf>, %224, %cst_91 [1] : vector<24x24xf32> to vector<24xf32>
    %226 = vector.shape_cast %225 : vector<24xf32> to vector<24x1xf32>
    %227 = vector.broadcast %226 : vector<24x1xf32> to vector<24x24xf32>
    %228 = arith.subf %224, %227 : vector<24x24xf32>
    %229 = math.exp %228 : vector<24x24xf32>
    %cst_92 = arith.constant dense<0.000000e+00> : vector<24xf32>
    %230 = vector.multi_reduction <add>, %229, %cst_92 [1] : vector<24x24xf32> to vector<24xf32>
    %231 = vector.shape_cast %230 : vector<24xf32> to vector<24x1xf32>
    %232 = tpu.reciprocal %231 {approx = true} : vector<24x1xf32> -> vector<24x1xf32>
    %233 = vector.broadcast %232 : vector<24x1xf32> to vector<24x24xf32>
    %234 = arith.mulf %229, %233 : vector<24x24xf32>
    %235 = arith.truncf %234 : vector<24x24xf32> to vector<24x24xbf16>
    %cst_93 = arith.constant dense<0.000000e+00> : vector<24x64xf32>
    %236 = tpu.matmul %235, %219, %cst_93 {dimension_numbers = #tpu.dot_dimension_numbers<[1], [0], [0], [1], [0, 0, 1, 1], [], []>} : vector<24x24xbf16>, vector<24x64xbf16>, vector<24x64xf32> -> vector<24x64xf32>
    %237 = arith.truncf %236 : vector<24x64xf32> to vector<24x64xbf16>
    %238 = arith.index_cast %c1_i32 : i32 to index
    %c0_94 = arith.constant 0 : index
    %c0_95 = arith.constant 0 : index
    %239 = vector.load %arg12[%238, %c0_94, %c0_95] : memref<2x64x64xbf16, #tpu.memory_space<vmem>>, vector<1x64x64xbf16>
    %240 = vector.shape_cast %239 : vector<1x64x64xbf16> to vector<64x64xbf16>
    %cst_96 = arith.constant dense<0.000000e+00> : vector<24x64xf32>
    %241 = tpu.matmul %237, %240, %cst_96 {dimension_numbers = #tpu.dot_dimension_numbers<[1], [0], [0], [1], [0, 0, 1, 1], [], []>} : vector<24x64xbf16>, vector<64x64xbf16>, vector<24x64xf32> -> vector<24x64xf32>
    %242 = arith.index_cast %c1_i32 : i32 to index
    %c0_97 = arith.constant 0 : index
    %c0_98 = arith.constant 0 : index
    %243 = vector.load %arg13[%242, %c0_97, %c0_98] : memref<2x1x64xf32, #tpu.memory_space<vmem>>, vector<1x1x64xf32>
    %244 = vector.shape_cast %243 : vector<1x1x64xf32> to vector<1x64xf32>
    %245 = vector.broadcast %244 : vector<1x64xf32> to vector<24x64xf32>
    %246 = arith.addf %241, %245 : vector<24x64xf32>
    %247 = arith.addf %160, %246 : vector<24x64xf32>
    %248 = arith.index_cast %c1_i32 : i32 to index
    %c0_99 = arith.constant 0 : index
    %c0_100 = arith.constant 0 : index
    %249 = vector.load %arg14[%248, %c0_99, %c0_100] : memref<2x1x64xf32, #tpu.memory_space<vmem>>, vector<1x1x64xf32>
    %250 = vector.shape_cast %249 : vector<1x1x64xf32> to vector<1x64xf32>
    %251 = arith.index_cast %c1_i32 : i32 to index
    %c0_101 = arith.constant 0 : index
    %c0_102 = arith.constant 0 : index
    %252 = vector.load %arg15[%251, %c0_101, %c0_102] : memref<2x1x64xf32, #tpu.memory_space<vmem>>, vector<1x1x64xf32>
    %253 = vector.shape_cast %252 : vector<1x1x64xf32> to vector<1x64xf32>
    %cst_103 = arith.constant dense<0.000000e+00> : vector<24xf32>
    %254 = vector.multi_reduction <add>, %247, %cst_103 [1] : vector<24x64xf32> to vector<24xf32>
    %255 = vector.shape_cast %254 : vector<24xf32> to vector<24x1xf32>
    %cst_104 = arith.constant 6.400000e+01 : f32
    %256 = vector.broadcast %cst_104 : f32 to vector<24x1xf32>
    %257 = arith.divf %255, %256 : vector<24x1xf32>
    %258 = vector.broadcast %257 : vector<24x1xf32> to vector<24x64xf32>
    %259 = arith.subf %247, %258 : vector<24x64xf32>
    %260 = arith.mulf %259, %259 : vector<24x64xf32>
    %cst_105 = arith.constant dense<0.000000e+00> : vector<24xf32>
    %261 = vector.multi_reduction <add>, %260, %cst_105 [1] : vector<24x64xf32> to vector<24xf32>
    %262 = vector.shape_cast %261 : vector<24xf32> to vector<24x1xf32>
    %cst_106 = arith.constant 6.400000e+01 : f32
    %263 = vector.broadcast %cst_106 : f32 to vector<24x1xf32>
    %264 = arith.divf %262, %263 : vector<24x1xf32>
    %265 = vector.broadcast %257 : vector<24x1xf32> to vector<24x64xf32>
    %266 = arith.subf %247, %265 : vector<24x64xf32>
    %cst_107 = arith.constant 9.99999974E-6 : f32
    %267 = vector.broadcast %cst_107 : f32 to vector<24x1xf32>
    %268 = arith.addf %264, %267 : vector<24x1xf32>
    %269 = math.rsqrt %268 : vector<24x1xf32>
    %270 = vector.broadcast %269 : vector<24x1xf32> to vector<24x64xf32>
    %271 = arith.mulf %266, %270 : vector<24x64xf32>
    %272 = vector.broadcast %250 : vector<1x64xf32> to vector<24x64xf32>
    %273 = arith.mulf %271, %272 : vector<24x64xf32>
    %274 = vector.broadcast %253 : vector<1x64xf32> to vector<24x64xf32>
    %275 = arith.addf %273, %274 : vector<24x64xf32>
    %276 = arith.truncf %275 : vector<24x64xf32> to vector<24x64xbf16>
    %277 = arith.index_cast %c1_i32 : i32 to index
    %c0_108 = arith.constant 0 : index
    %c0_109 = arith.constant 0 : index
    %278 = vector.load %arg16[%277, %c0_108, %c0_109] : memref<2x64x256xbf16, #tpu.memory_space<vmem>>, vector<1x64x256xbf16>
    %279 = vector.shape_cast %278 : vector<1x64x256xbf16> to vector<64x256xbf16>
    %cst_110 = arith.constant dense<0.000000e+00> : vector<24x256xf32>
    %280 = tpu.matmul %276, %279, %cst_110 {dimension_numbers = #tpu.dot_dimension_numbers<[1], [0], [0], [1], [0, 0, 1, 1], [], []>} : vector<24x64xbf16>, vector<64x256xbf16>, vector<24x256xf32> -> vector<24x256xf32>
    %281 = arith.index_cast %c1_i32 : i32 to index
    %c0_111 = arith.constant 0 : index
    %c0_112 = arith.constant 0 : index
    %282 = vector.load %arg17[%281, %c0_111, %c0_112] : memref<2x1x256xf32, #tpu.memory_space<vmem>>, vector<1x1x256xf32>
    %283 = vector.shape_cast %282 : vector<1x1x256xf32> to vector<1x256xf32>
    %284 = vector.broadcast %283 : vector<1x256xf32> to vector<24x256xf32>
    %285 = arith.addf %280, %284 : vector<24x256xf32>
    %286 = arith.mulf %285, %285 : vector<24x256xf32>
    %287 = arith.mulf %285, %286 : vector<24x256xf32>
    %cst_113 = arith.constant 4.471500e-02 : f32
    %288 = vector.broadcast %cst_113 : f32 to vector<24x256xf32>
    %289 = arith.mulf %288, %287 : vector<24x256xf32>
    %290 = arith.addf %285, %289 : vector<24x256xf32>
    %cst_114 = arith.constant 0.797884583 : f32
    %291 = vector.broadcast %cst_114 : f32 to vector<24x256xf32>
    %292 = arith.mulf %291, %290 : vector<24x256xf32>
    %293 = math.tanh %292 : vector<24x256xf32>
    %cst_115 = arith.constant 1.000000e+00 : f32
    %294 = vector.broadcast %cst_115 : f32 to vector<24x256xf32>
    %295 = arith.addf %294, %293 : vector<24x256xf32>
    %cst_116 = arith.constant 5.000000e-01 : f32
    %296 = vector.broadcast %cst_116 : f32 to vector<24x256xf32>
    %297 = arith.mulf %296, %295 : vector<24x256xf32>
    %298 = arith.mulf %285, %297 : vector<24x256xf32>
    %299 = arith.truncf %298 : vector<24x256xf32> to vector<24x256xbf16>
    %300 = arith.index_cast %c1_i32 : i32 to index
    %c0_117 = arith.constant 0 : index
    %c0_118 = arith.constant 0 : index
    %301 = vector.load %arg18[%300, %c0_117, %c0_118] : memref<2x256x64xbf16, #tpu.memory_space<vmem>>, vector<1x256x64xbf16>
    %302 = vector.shape_cast %301 : vector<1x256x64xbf16> to vector<256x64xbf16>
    %cst_119 = arith.constant dense<0.000000e+00> : vector<24x64xf32>
    %303 = tpu.matmul %299, %302, %cst_119 {dimension_numbers = #tpu.dot_dimension_numbers<[1], [0], [0], [1], [0, 0, 1, 1], [], []>} : vector<24x256xbf16>, vector<256x64xbf16>, vector<24x64xf32> -> vector<24x64xf32>
    %304 = arith.index_cast %c1_i32 : i32 to index
    %c0_120 = arith.constant 0 : index
    %c0_121 = arith.constant 0 : index
    %305 = vector.load %arg19[%304, %c0_120, %c0_121] : memref<2x1x64xf32, #tpu.memory_space<vmem>>, vector<1x1x64xf32>
    %306 = vector.shape_cast %305 : vector<1x1x64xf32> to vector<1x64xf32>
    %307 = vector.broadcast %306 : vector<1x64xf32> to vector<24x64xf32>
    %308 = arith.addf %303, %307 : vector<24x64xf32>
    %309 = arith.addf %247, %308 : vector<24x64xf32>
    %c2_i32 = arith.constant 2 : i32
    %310 = vector.extract_strided_slice %309 {offsets = [0, 0], sizes = [1, 64], strides = [1, 1]} : vector<24x64xf32> to vector<1x64xf32>
    %c0_122 = arith.constant 0 : index
    %c0_123 = arith.constant 0 : index
    %311 = vector.load %arg20[%c0_122, %c0_123] : memref<1x64xf32, #tpu.memory_space<vmem>>, vector<1x64xf32>
    %c0_124 = arith.constant 0 : index
    %c0_125 = arith.constant 0 : index
    %312 = vector.load %arg21[%c0_124, %c0_125] : memref<1x64xf32, #tpu.memory_space<vmem>>, vector<1x64xf32>
    %cst_126 = arith.constant dense<0.000000e+00> : vector<1xf32>
    %313 = vector.multi_reduction <add>, %310, %cst_126 [1] : vector<1x64xf32> to vector<1xf32>
    %314 = vector.shape_cast %313 : vector<1xf32> to vector<1x1xf32>
    %cst_127 = arith.constant 6.400000e+01 : f32
    %315 = vector.broadcast %cst_127 : f32 to vector<1x1xf32>
    %316 = arith.divf %314, %315 : vector<1x1xf32>
    %317 = vector.broadcast %316 : vector<1x1xf32> to vector<1x64xf32>
    %318 = arith.subf %310, %317 : vector<1x64xf32>
    %319 = arith.mulf %318, %318 : vector<1x64xf32>
    %cst_128 = arith.constant dense<0.000000e+00> : vector<1xf32>
    %320 = vector.multi_reduction <add>, %319, %cst_128 [1] : vector<1x64xf32> to vector<1xf32>
    %321 = vector.shape_cast %320 : vector<1xf32> to vector<1x1xf32>
    %cst_129 = arith.constant 6.400000e+01 : f32
    %322 = vector.broadcast %cst_129 : f32 to vector<1x1xf32>
    %323 = arith.divf %321, %322 : vector<1x1xf32>
    %324 = vector.broadcast %316 : vector<1x1xf32> to vector<1x64xf32>
    %325 = arith.subf %310, %324 : vector<1x64xf32>
    %cst_130 = arith.constant 9.99999974E-6 : f32
    %326 = vector.broadcast %cst_130 : f32 to vector<1x1xf32>
    %327 = arith.addf %323, %326 : vector<1x1xf32>
    %328 = math.rsqrt %327 : vector<1x1xf32>
    %329 = vector.broadcast %328 : vector<1x1xf32> to vector<1x64xf32>
    %330 = arith.mulf %325, %329 : vector<1x64xf32>
    %331 = arith.mulf %330, %311 : vector<1x64xf32>
    %332 = arith.addf %331, %312 : vector<1x64xf32>
    %333 = arith.truncf %332 : vector<1x64xf32> to vector<1x64xbf16>
    %c0_131 = arith.constant 0 : index
    %c0_132 = arith.constant 0 : index
    %334 = vector.load %arg22[%c0_131, %c0_132] : memref<64x32xbf16, #tpu.memory_space<vmem>>, vector<64x32xbf16>
    %cst_133 = arith.constant dense<0.000000e+00> : vector<1x32xf32>
    %335 = tpu.matmul %333, %334, %cst_133 {dimension_numbers = #tpu.dot_dimension_numbers<[1], [0], [0], [1], [0, 0, 1, 1], [], []>} : vector<1x64xbf16>, vector<64x32xbf16>, vector<1x32xf32> -> vector<1x32xf32>
    %c0_134 = arith.constant 0 : index
    %c0_135 = arith.constant 0 : index
    %c0_136 = arith.constant 0 : index
    %336 = vector.load %arg23[%c0_134, %c0_135, %c0_136] : memref<1x1x32xf32, #tpu.memory_space<vmem>>, vector<1x1x32xf32>
    %337 = vector.shape_cast %336 : vector<1x1x32xf32> to vector<1x32xf32>
    %338 = vector.shape_cast %335 : vector<1x32xf32> to vector<1x1x32xf32>
    tpu.vector_store %arg23[%c0_134, %c0_135, %c0_136], %338 {strides = array<i32>} : memref<1x1x32xf32, #tpu.memory_space<vmem>>, vector<1x1x32xf32>,
    return
  }
  func.func @transform_0(%arg0: i32) -> (i32, i32, i32) {
    %c0_i32 = arith.constant 0 : i32
    %c0_i32_0 = arith.constant 0 : i32
    %c0_i32_1 = arith.constant 0 : i32
    return %arg0, %c0_i32, %c0_i32_0 : i32, i32, i32
  }
  func.func @transform_1(%arg0: i32) -> (i32, i32) {
    %c0_i32 = arith.constant 0 : i32
    %c0_i32_0 = arith.constant 0 : i32
    %c0_i32_1 = arith.constant 0 : i32
    return %c0_i32, %c0_i32_0 : i32, i32
  }
  func.func @transform_2(%arg0: i32) -> (i32, i32) {
    %c0_i32 = arith.constant 0 : i32
    %c0_i32_0 = arith.constant 0 : i32
    %c0_i32_1 = arith.constant 0 : i32
    return %c0_i32, %c0_i32_0 : i32, i32
  }
  func.func @transform_3(%arg0: i32) -> (i32, i32, i32) {
    %c0_i32 = arith.constant 0 : i32
    %c0_i32_0 = arith.constant 0 : i32
    %c0_i32_1 = arith.constant 0 : i32
    %c0_i32_2 = arith.constant 0 : i32
    return %c0_i32, %c0_i32_0, %c0_i32_1 : i32, i32, i32
  }
  func.func @transform_4(%arg0: i32) -> (i32, i32, i32) {
    %c0_i32 = arith.constant 0 : i32
    %c0_i32_0 = arith.constant 0 : i32
    %c0_i32_1 = arith.constant 0 : i32
    %c0_i32_2 = arith.constant 0 : i32
    return %c0_i32, %c0_i32_0, %c0_i32_1 : i32, i32, i32
  }
  func.func @transform_5(%arg0: i32) -> (i32, i32, i32) {
    %c0_i32 = arith.constant 0 : i32
    %c0_i32_0 = arith.constant 0 : i32
    %c0_i32_1 = arith.constant 0 : i32
    %c0_i32_2 = arith.constant 0 : i32
    return %c0_i32, %c0_i32_0, %c0_i32_1 : i32, i32, i32
  }
  func.func @transform_6(%arg0: i32) -> (i32, i32, i32) {
    %c0_i32 = arith.constant 0 : i32
    %c0_i32_0 = arith.constant 0 : i32
    %c0_i32_1 = arith.constant 0 : i32
    %c0_i32_2 = arith.constant 0 : i32
    return %c0_i32, %c0_i32_0, %c0_i32_1 : i32, i32, i32
  }
  func.func @transform_7(%arg0: i32) -> (i32, i32, i32) {
    %c0_i32 = arith.constant 0 : i32
    %c0_i32_0 = arith.constant 0 : i32
    %c0_i32_1 = arith.constant 0 : i32
    %c0_i32_2 = arith.constant 0 : i32
    return %c0_i32, %c0_i32_0, %c0_i32_1 : i32, i32, i32
  }
  func.func @transform_8(%arg0: i32) -> (i32, i32, i32) {
    %c0_i32 = arith.constant 0 : i32
    %c0_i32_0 = arith.constant 0 : i32
    %c0_i32_1 = arith.constant 0 : i32
    %c0_i32_2 = arith.constant 0 : i32
    return %c0_i32, %c0_i32_0, %c0_i32_1 : i32, i32, i32
  }
  func.func @transform_9(%arg0: i32) -> (i32, i32, i32) {
    %c0_i32 = arith.constant 0 : i32
    %c0_i32_0 = arith.constant 0 : i32
    %c0_i32_1 = arith.constant 0 : i32
    %c0_i32_2 = arith.constant 0 : i32
    return %c0_i32, %c0_i32_0, %c0_i32_1 : i32, i32, i32
  }
  func.func @transform_10(%arg0: i32) -> (i32, i32, i32) {
    %c0_i32 = arith.constant 0 : i32
    %c0_i32_0 = arith.constant 0 : i32
    %c0_i32_1 = arith.constant 0 : i32
    %c0_i32_2 = arith.constant 0 : i32
    return %c0_i32, %c0_i32_0, %c0_i32_1 : i32, i32, i32
  }
  func.func @transform_11(%arg0: i32) -> (i32, i32, i32) {
    %c0_i32 = arith.constant 0 : i32
    %c0_i32_0 = arith.constant 0 : i32
    %c0_i32_1 = arith.constant 0 : i32
    %c0_i32_2 = arith.constant 0 : i32
    return %c0_i32, %c0_i32_0, %c0_i32_1 : i32, i32, i32
  }
  func.func @transform_12(%arg0: i32) -> (i32, i32, i32) {
    %c0_i32 = arith.constant 0 : i32
    %c0_i32_0 = arith.constant 0 : i32
    %c0_i32_1 = arith.constant 0 : i32
    %c0_i32_2 = arith.constant 0 : i32
    return %c0_i32, %c0_i32_0, %c0_i32_1 : i32, i32, i32
  }
  func.func @transform_13(%arg0: i32) -> (i32, i32, i32) {
    %c0_i32 = arith.constant 0 : i32
    %c0_i32_0 = arith.constant 0 : i32
    %c0_i32_1 = arith.constant 0 : i32
    %c0_i32_2 = arith.constant 0 : i32
    return %c0_i32, %c0_i32_0, %c0_i32_1 : i32, i32, i32
  }
  func.func @transform_14(%arg0: i32) -> (i32, i32, i32) {
    %c0_i32 = arith.constant 0 : i32
    %c0_i32_0 = arith.constant 0 : i32
    %c0_i32_1 = arith.constant 0 : i32
    %c0_i32_2 = arith.constant 0 : i32
    return %c0_i32, %c0_i32_0, %c0_i32_1 : i32, i32, i32
  }
  func.func @transform_15(%arg0: i32) -> (i32, i32, i32) {
    %c0_i32 = arith.constant 0 : i32
    %c0_i32_0 = arith.constant 0 : i32
    %c0_i32_1 = arith.constant 0 : i32
    %c0_i32_2 = arith.constant 0 : i32
    return %c0_i32, %c0_i32_0, %c0_i32_1 : i32, i32, i32
  }
  func.func @transform_16(%arg0: i32) -> (i32, i32, i32) {
    %c0_i32 = arith.constant 0 : i32
    %c0_i32_0 = arith.constant 0 : i32
    %c0_i32_1 = arith.constant 0 : i32
    %c0_i32_2 = arith.constant 0 : i32
    return %c0_i32, %c0_i32_0, %c0_i32_1 : i32, i32, i32
  }
  func.func @transform_17(%arg0: i32) -> (i32, i32, i32) {
    %c0_i32 = arith.constant 0 : i32
    %c0_i32_0 = arith.constant 0 : i32
    %c0_i32_1 = arith.constant 0 : i32
    %c0_i32_2 = arith.constant 0 : i32
    return %c0_i32, %c0_i32_0, %c0_i32_1 : i32, i32, i32
  }
  func.func @transform_18(%arg0: i32) -> (i32, i32, i32) {
    %c0_i32 = arith.constant 0 : i32
    %c0_i32_0 = arith.constant 0 : i32
    %c0_i32_1 = arith.constant 0 : i32
    %c0_i32_2 = arith.constant 0 : i32
    return %c0_i32, %c0_i32_0, %c0_i32_1 : i32, i32, i32
  }
  func.func @transform_19(%arg0: i32) -> (i32, i32) {
    %c0_i32 = arith.constant 0 : i32
    %c0_i32_0 = arith.constant 0 : i32
    %c0_i32_1 = arith.constant 0 : i32
    return %c0_i32, %c0_i32_0 : i32, i32
  }
  func.func @transform_20(%arg0: i32) -> (i32, i32) {
    %c0_i32 = arith.constant 0 : i32
    %c0_i32_0 = arith.constant 0 : i32
    %c0_i32_1 = arith.constant 0 : i32
    return %c0_i32, %c0_i32_0 : i32, i32
  }
  func.func @transform_21(%arg0: i32) -> (i32, i32) {
    %c0_i32 = arith.constant 0 : i32
    %c0_i32_0 = arith.constant 0 : i32
    %c0_i32_1 = arith.constant 0 : i32
    return %c0_i32, %c0_i32_0 : i32, i32
  }
  func.func @transform_22(%arg0: i32) -> (i32, i32, i32) {
    %c0_i32 = arith.constant 0 : i32
    %c0_i32_0 = arith.constant 0 : i32
    %c0_i32_1 = arith.constant 0 : i32
    return %arg0, %c0_i32, %c0_i32_0 : i32, i32, i32
  }
}

</mosaic_0001>

<bundles_post_ra>
// kernel: vit_encoder_forward.1
= control target key start
LH: loop header
LB: loop body
LE: loop exit
PB: predicated region body
PF: predicated region fallthrough
CT: control target
= control target key end

     0   :  { %s4502_s0 = inlined_call_operand.vmem [shape: bf16[2,24,64], index: 0, kind: input, shape index: {}]   ;;  %s4503_s1 = inlined_call_operand.vmem [shape: bf16[64,64], index: 1, kind: input, shape index: {}]   ;;  %s4504_s2 = inlined_call_operand.vmem [shape: f32[24,64], index: 2, kind: input, shape index: {}]   ;;  %s4505_s3 = inlined_call_operand.vmem [shape: f32[2,1,64], index: 3, kind: input, shape index: {}]   ;;  %s4506_s4 = inlined_call_operand.vmem [shape: f32[2,1,64], index: 4, kind: input, shape index: {}]   ;;  %s4507_s5 = inlined_call_operand.vmem [shape: bf16[2,64,64], index: 5, kind: input, shape index: {}]   ;;  %s4508_s6 = inlined_call_operand.vmem [shape: f32[2,1,64], index: 6, kind: input, shape index: {}]   ;;  %s4509_s7 = inlined_call_operand.vmem [shape: bf16[2,64,64], index: 7, kind: input, shape index: {}]   ;;  %s4510_s8 = inlined_call_operand.vmem [shape: f32[2,1,64], index: 8, kind: input, shape index: {}]   ;;  %s4511_s9 = inlined_call_operand.vmem [shape: bf16[2,64,64], index: 9, kind: input, shape index: {}]   ;;  %s4512_s10 = inlined_call_operand.vmem [shape: f32[2,1,64], index: 10, kind: input, shape index: {}]   ;;  %s4513_s11 = inlined_call_operand.vmem [shape: bf16[2,64,64], index: 11, kind: input, shape index: {}]   ;;  %s4514_s12 = inlined_call_operand.vmem [shape: f32[2,1,64], index: 12, kind: input, shape index: {}]   ;;  %s4515_s13 = inlined_call_operand.vmem [shape: f32[2,1,64], index: 13, kind: input, shape index: {}]   ;;  %s4516_s14 = inlined_call_operand.vmem [shape: f32[2,1,64], index: 14, kind: input, shape index: {}]   ;;  %s4517_s15 = inlined_call_operand.vmem [shape: bf16[2,64,256], index: 15, kind: input, shape index: {}]   ;;  %s4518_s16 = inlined_call_operand.vmem [shape: f32[2,1,256], index: 16, kind: input, shape index: {}]   ;;  %s4519_s17 = inlined_call_operand.vmem [shape: bf16[2,256,64], index: 17, kind: input, shape index: {}]   ;;  %s4520_s18 = inlined_call_operand.vmem [shape: f32[2,1,64], index: 18, kind: input, shape index: {}]   ;;  %s4521_s19 = inlined_call_operand.vmem [shape: f32[1,64], index: 19, kind: input, shape index: {}]   ;;  %s4522_s20 = inlined_call_operand.vmem [shape: f32[1,64], index: 20, kind: input, shape index: {}]   ;;  %s4523_s21 = inlined_call_operand.vmem [shape: bf16[64,32], index: 21, kind: input, shape index: {}]   ;;  %s4524_s22 = inlined_call_operand.hbm [shape: f32[2,1,32], index: 22, kind: output, shape index: {}]  }
   0x1   :  { %4544 = sst [smem:[#allocation12_spill]] %s4502_s0 }
   0x2   :  { %4545 = sst [smem:[#allocation13_spill]] %s4503_s1 }
   0x3   :  { %4546 = sst [smem:[#allocation14_spill]] %s4504_s2 }
   0x4   :  { %4547 = sst [smem:[#allocation15_spill]] %s4505_s3 }
   0x5   :  { %4548 = sst [smem:[#allocation16_spill]] %s4506_s4 }
   0x6   :  { %4549 = sst [smem:[#allocation17_spill]] %s4507_s5 }
   0x7   :  { %4550 = sst [smem:[#allocation18_spill]] %s4508_s6 }
   0x8   :  { %4551 = sst [smem:[#allocation19_spill]] %s4524_s22 }
   0x9   :  { %27 = vsyncpa [#allocation3], 0 }
   0xa   :  { %29 = vsyncpa [#allocation3 + $0x1], 0  ;;  %s3908_s3 = smov 0   ;;  %s3910_s28 = smov 0  }
   0xb   :  { %s3912_s29 = smov 0   ;;  %s3914_s30 = smov 0  }
   0xc LB: > { %4552 = sst [smem:[#allocation5_spill]] %s3774_s3  ;;  %s3929_s4 = sadd.s32 4294967295, %s3786_s30   ;;  %s3786_s30 = sphi %s3914_s30, %s4575_s30   ;;  %s3782_s29 = sphi %s3912_s29, %s4580_s29   ;;  %s3778_s28 = sphi %s3910_s28, %s4579_s28   ;;  %s3774_s3 = sphi %s3908_s3, %s4578_s3  }
   0xd   : > { %4553 = sst [smem:[#allocation6_spill]] %s3782_s29  ;;  %s2990_s0 = sadd.s32 4294967294, %s3786_s30  }
   0xe   : > { %4554 = sst [smem:[#allocation7_spill]] %s3786_s30  ;;  %s3933_s23 = sadd.s32 1, %s3786_s30  }
   0xf   : > { %4555 = sst [smem:[#allocation8_spill]] %s3933_s23  ;;  %s509_s1 = sadd.s32 1, %s3782_s29 }
  0x10   : > { %s506_s5 = ssub.s32 %s3786_s30, %s3933_s23  ;;  %p519_p0 = scmp.ne.s32.totalorder %s3782_s29, %s3778_s28 }
  0x11   : > { %p507_p1 = scmp.eq.s32.totalorder %s506_s5, 0  ;;  %p520_p2 = scmp.eq.s32.totalorder %s3929_s4, 1 }
  0x12   : > { %p525_p3 = scmp.ne.s32.totalorder %s3778_s28, %s3774_s3  ;;  %p526_p4 = scmp.eq.s32.totalorder %s2990_s0, 1 }
  0x13   : > { %s3944_s24 = scalar_select %p507_p1, %s3782_s29, %s509_s1  }
  0x14   : > { %p3946_p5 = por %p520_p2, %p519_p0  ;;  %p3950_p6 = por %p526_p4, %p525_p3 }
  0x15   : > { %4556 = sst [smem:[#allocation9_spill]] %s3944_s24  ;;  %p2993_p7 = scmp.ge.s32.totalorder %s3786_s30, 1 }
  0x16   : > { %s4557_s6 = scalar_select %p3946_p5, 1, 0 }
  0x17   : > { %s4559_s25 = scalar_select %p3950_p6, 1, 0 }
  0x18   : > { %4558 = sst [smem:[#allocation10_spill]] %s4557_s6  ;;  %p615_p8 = scmp.lt.s32.totalorder %s3786_s30, 3 }
  0x19   : > { %4560 = sst [smem:[#allocation11_spill]] %s4559_s25 }
  0x1a   : > { %p616_p9 = pnand %p2993_p7, %p615_p8 }
  0x1b   : > { %s4561_s27 = sld [smem:[#allocation13_spill]] (!%p616_p9)  ;;  %p676_p10 = scmp.lt.s32.totalorder (!%p616_p9), %s3929_s4, 1  ;;  %vm728_vm0 = vcmask (!%p616_p9), 523264   ;;  %v3559_v35 = vld [vmem:[%s4509_s7] sm:$0xff] (!%p616_p9)   ;;  %v3561_v37 = vld [vmem:[%s4509_s7 + $0x8] sm:$0xff] (!%p616_p9)   ;;  %v3563_v39 = vld [vmem:[%s4509_s7 + $0x10] sm:$0xff] (!%p616_p9)  }
  0x1c   : > { %619 = sbr.rel (%p616_p9) target bundleno = 5447 (0x1547), region = 108  ;;  %s4562_s2 = sld [smem:[#allocation12_spill]] (!%p616_p9)  ;;  %3374 = vmatprep.subr.bf16.mxu0 (!%p616_p9), %v3559_v35  ;;  %v3565_v41 = vld [vmem:[%s4509_s7 + $0x18] sm:$0xff] (!%p616_p9)   ;;  %v3566_v42 = vld [vmem:[%s4511_s9] sm:$0xff] (!%p616_p9)   ;;  %vm1230_vm1 = vcmask (!%p616_p9), 1043456   ;;  %vm1188_vm3 = vcmask (!%p616_p9), 195584  }
  0x1d   : > { %s4563_s0 = sld [smem:[#allocation14_spill]] (!%p616_p9)  ;;  %3375 = vmatpush3.bf16.msra.mxu0 (!%p616_p9), %v3559_v35  ;;  %s4567_s29 = sld [smem:[#allocation16_spill]] (!%p616_p9)  ;;  %vm2828_vm4 = vcmask (!%p616_p9), 516096   ;;  %vm3791_vm5 = vmmov (!%p616_p9), 0   ;;  %vm2920_vm6 = vcmask (!%p616_p9), 253952  }
  0x1e   : > { %3376 = vmatprep.subr.bf16.mxu0 (!%p616_p9), %v3561_v37  ;;  %s4569_s22 = sld [smem:[#allocation18_spill]] (!%p616_p9)  ;;  %s4571_s26 = sld [smem:[#allocation19_spill]] (!%p616_p9) }
  0x21   : > { %v3552_v0 = vld [vmem:[%s4561_s27] sm:$0xff] (!%p616_p9)   ;;  %v3553_v1 = vld [vmem:[%s4561_s27 + $0x8] sm:$0xff] (!%p616_p9)   ;;  %v3554_v2 = vld [vmem:[%s4561_s27 + $0x10] sm:$0xff] (!%p616_p9)   ;;  %3377 = vmatpush3.bf16.msra.mxu0 (!%p616_p9), %v3561_v37 }
  0x22   : > { %3350 = vmatprep.subr.bf16.mxu1 (!%p616_p9), %v3552_v0  ;;  %v3555_v3 = vld [vmem:[%s4561_s27 + $0x18] sm:$0xff] (!%p616_p9)   ;;  %3378 = vmatprep.subr.bf16.mxu0 (!%p616_p9), %v3563_v39 }
  0x23   : > { %s677_s5 = scalar_select %p676_p10, %s3929_s4, 1  ;;  %3351 = vmatpush3.bf16.msra.mxu1 %v3552_v0  ;;  %v695_v6 = vld [vmem:[%s4563_s0 + $0x10] sm:$0xff]  ;;  %v693_v7 = vld [vmem:[%s4563_s0] sm:$0xff]  ;;  %v694_v11 = vld [vmem:[%s4563_s0 + $0x8] sm:$0xff] }
  0x24   : > { %3352 = vmatprep.subr.bf16.mxu1 %v3553_v1  ;;  %s4568_s24 = smov %s4567_s29  ;;  %v3004_v60 = vld [vmem:[%s4567_s29] ss:$0 sm:$0xff]  ;;  %s674_s29 = sand.u32 1, %s3778_s28  }
  0x25   : > { %s3508_s23 = smul.u32 12, %s677_s5  ;;  %s4564_s5 = sld [smem:[#allocation17_spill]]  ;;  %3379 = vmatpush3.bf16.msra.mxu0 %v3563_v39 }
  0x26   : > { %3380 = vmatprep.subr.bf16.mxu0 %v3565_v41  ;;  %s675_s25 = scalar_lea.vmem [#allocation2], %s674_s29  ;;  %s2923_s6 = scalar_lea.sflag [#allocation3], %s674_s29 }
  0x27   : > { %s680_s3 = scalar_lea.vmem %s4562_s2, %s3508_s23  ;;  %3353 = vmatpush3.bf16.msra.mxu1 %v3553_v1  ;;  %s3216_s23 = sshll.u32 %s3929_s4, 4 }
  0x28   : > { %3354 = vmatprep.subr.bf16.mxu1 %v3554_v2  ;;  %v3556_v4 = vld [vmem:[%s680_s3] sm:$0xff]   ;;  %v3557_v5 = vld [vmem:[%s680_s3 + $0x8] ss:$0 sps:$4 sm:$0xff]   ;;  %s4565_s3 = sld [smem:[#allocation15_spill]]  ;;  %s2935_s30 = sshll.u32 %s675_s25, 4  ;;  %s4462_s30 = int_to_ptr.vmem [resolvable:$true] %s2935_s30 }
  0x29   : > { %3358 = vmatprep.mubr.msk.bf16.mxu1 %vm728_vm0, %v3556_v4  ;;  %3381 = vmatpush3.bf16.msra.mxu0 %v3565_v41  ;;  %v3567_v4 = vld [vmem:[%s4511_s9 + $0x8] sm:$0xff]   ;;  %s4460_s2 = scalar_lea.hbm %s4571_s26, %s3216_s23  ;;  %s3724_s27 = scalar_lea.vmem %s4462_s30, 16 }
  0x2a   : > { %p3725_p11 = scmp.ne.s32.totalorder %s4462_s30, %s3724_s27  ;;  %s3792_s4 = smov [#allocation2]  }
  0x2b   : > { %3355 = vmatpush3.bf16.msra.mxu1 %v3554_v2  ;;  %v3558_v34 = vld [vmem:[%s4564_s5] sm:$0xff]   ;;  %v3560_v36 = vld [vmem:[%s4564_s5 + $0x8] sm:$0xff]   ;;  %v3562_v38 = vld [vmem:[%s4564_s5 + $0x10] sm:$0xff]  }
  0x2c   : > { %3356 = vmatprep.subr.bf16.mxu1 %v3555_v3  ;;  %v3564_v40 = vld [vmem:[%s4564_s5 + $0x18] sm:$0xff]   ;;  %p3726_p12 = pnand %p3725_p11, %p3946_p5 }
  0x2e   : > { %s4566_s1 = smov %s4565_s3  ;;  %v3003_v54 = vld [vmem:[%s4565_s3] ss:$0 sm:$0xff]  ;;  %p3727_p13 = pneg %p3726_p12 }
  0x2f   : > { %3357 = vmatpush3.bf16.msra.mxu1 %v3555_v3 }
  0x30   : > { %3362 = vmatprep.subr.bf16.mxu1 %v3558_v34 }
  0x32   : > { %3359 = vmatmul.mubr.msk.bf16.vlgmr.msra.gmra.mrb[0].mxu1 %vm728_vm0, %v3557_v5  ;;  %v3568_v5 = vld [vmem:[%s4511_s9 + $0x10] sm:$0xff]  }
  0x33   : > { %3363 = vmatpush3.bf16.msra.mxu1 %v3558_v34 }
  0x34   : > { %3364 = vmatprep.subr.bf16.mxu1 %v3560_v36 }
  0x37   : > { %3365 = vmatpush3.bf16.msra.mxu1 %v3560_v36 }
  0x38   : > { %3366 = vmatprep.subr.bf16.mxu1 %v3562_v38 }
  0x3b   : > { %3367 = vmatpush3.bf16.msra.mxu1 %v3562_v38 }
  0x3c   : > { %3368 = vmatprep.subr.bf16.mxu1 %v3564_v40 }
  0x3f   : > { %3369 = vmatpush3.bf16.msra.mxu1 %v3564_v40 }
  0x40   : > { %3386 = vmatprep.subr.bf16.mxu1 %v3566_v42 }
 0x105   : > { %v3360_v8 = vpop.f32.mrb[0].mxu1 }
 0x106   : > { %v3981_v9 = vadd.f32 %v3360_v8, %v695_v6  ;;  %v769_v10 = vpop.f32.mrb[1].mxu1  ;;  %v3569_v6 = vld [vmem:[%s4511_s9 + $0x18] sm:$0xff]  }
 0x107   : > { %v3986_v12 = vadd.f32 %v769_v10, %v693_v7  ;;  %v3361_v13 = vpop.f32.mrb[2].mxu1  ;;  %v3012_v10 = vld [vmem:[%s4510_s8] ss:$0 sm:$0xff] }
 0x108   : > { %v772_v14 = vpop.f32.mrb[3].mxu1  ;;  %v795_v15 = vsel %vm728_vm0, %v3981_v9, 0.0 }
 0x109   : > { %v3990_v16 = vadd.f32 %v772_v14, %v694_v11  ;;  %796 = vadd.xlane.f32.xlu1 %v795_v15  ;;  %v789_v17 = vsel %vm728_vm0, %v3986_v12, 0.0  ;;  %v3005_v11 = vld [vmem:[%s4569_s22] ss:$0 sm:$0xff] }
 0x10a   : > { %790 = vadd.xlane.f32.xlu0 %v789_v17 }
 0x10b   : > { %v792_v18 = vsel %vm728_vm0, %v3990_v16, 0.0 }
 0x10e   : > { %793 = vadd.xlane.f32.xlu0 %v792_v18 }
 0x196   : > { %v797_v19 = vpop.xlane.xlu1 %796 }
 0x197   : > { %v801_v20 = vmul.f32 0.015625, %v797_v19  ;;  %v791_v21 = vpop.xlane.xlu0 %790 }
 0x198   : > { %v799_v22 = vmul.f32 0.015625, %v791_v21 }
 0x199   : > { %v804_v23 = vsub.f32 %v3981_v9, %v801_v20 }
 0x19a   : > { %v802_v24 = vsub.f32 %v3986_v12, %v799_v22 }
 0x19b   : > { %v794_v25 = vpop.xlane.xlu0 %793  ;;  %v807_v30 = vmul.f32 %v804_v23, %v804_v23 }
 0x19c   : > { %v800_v26 = vmul.f32 0.015625, %v794_v25  ;;  %v805_v27 = vmul.f32 %v802_v24, %v802_v24 }
 0x19d   : > { %v814_v32 = vsel %vm728_vm0, %v807_v30, 0.0 }
 0x19e   : > { %v803_v28 = vsub.f32 %v3990_v16, %v800_v26  ;;  %v808_v29 = vsel %vm728_vm0, %v805_v27, 0.0 }
 0x19f   : > { %809 = vadd.xlane.f32.xlu1 %v808_v29 }
 0x1a0   : > { %v806_v31 = vmul.f32 %v803_v28, %v803_v28 }
 0x1a2   : > { %v811_v33 = vsel %vm728_vm0, %v806_v31, 0.0  ;;  %v3019_v31 = vld [vmem:[%s4512_s10] ss:$0 sm:$0xff] }
 0x1a3   : > { %815 = vadd.xlane.f32.xlu1 %v814_v32  ;;  %812 = vadd.xlane.f32.xlu0 %v811_v33 }
 0x22c   : > { %v810_v43 = vpop.xlane.xlu1 %809 }
 0x22d   : > { %v817_v44 = vmul.f32 0.015625, %v810_v43  ;;  %v783_v43 = vlaneseq }
 0x22f   : > { %v820_v45 = vadd.f32 1e-05, %v817_v44  ;;  %v784_v44 = vand.u32 127, %v783_v43 }
 0x230   : > { %v816_v46 = vpop.xlane.xlu1 %815  ;;  %v813_v47 = vpop.xlane.xlu0 %812 }
 0x231   : > { %3650 = vrsqrt.f32 %v820_v45  ;;  %v819_v48 = vmul.f32 0.015625, %v816_v46  ;;  %v818_v49 = vmul.f32 0.015625, %v813_v47  ;;  %vm785_vm2 = vcmp.lt.s32.totalorder %v784_v44, 17 }
 0x232   : > { %v3788_v47 = vmov -1e+30  }
 0x233   : > { %v822_v50 = vadd.f32 1e-05, %v819_v48  ;;  %v821_v51 = vadd.f32 1e-05, %v818_v49  ;;  %v4068_v48 = vsel %vm785_vm2, 0.0, %v3788_v47 }
 0x235   : > { %3652 = vrsqrt.f32 %v822_v50 }
 0x236   : > { %3654 = vrsqrt.f32 %v821_v51 }
 0x23b   : > { %v3651_v52 = vpop.eup %3650 }
 0x23c   : > { %v826_v53 = vmul.f32 %v3651_v52, %v802_v24 }
 0x23e   : > { %v835_v59 = vmul.f32 %v3003_v54, %v826_v53 }
 0x23f   : > { %v3653_v55 = vpop.eup %3652 }
 0x240   : > { %v3655_v56 = vpop.eup %3654  ;;  %v828_v57 = vmul.f32 %v3653_v55, %v804_v23  ;;  %v844_v0 = vadd.f32 %v3004_v60, %v835_v59 }
 0x241   : > { %v827_v58 = vmul.f32 %v3655_v56, %v803_v28 }
 0x242   : > { %v837_v61 = vmul.f32 %v3003_v54, %v828_v57 }
 0x243   : > { %v836_v62 = vmul.f32 %v3003_v54, %v827_v58 }
 0x244   : > { %v846_v63 = vadd.f32 %v3004_v60, %v837_v61 }
 0x245   : > { %v845_v1 = vadd.f32 %v3004_v60, %v836_v62 }
 0x246   : > { %v848_v2 = vpack.c.bf16 %v846_v63, %v846_v63 }
 0x247   : > { %v847_v3 = vpack.c.bf16 %v845_v1, %v844_v0 }
 0x249   : > { %3370 = vmatprep.mubr.msk.bf16.mxu1 %vm728_vm0, %v847_v3  ;;  %3382 = vmatprep.mubr.msk.bf16.mxu0 %vm728_vm0, %v847_v3 }
 0x24a   : > { %3371 = vmatmul.mubr.msk.bf16.vlgmr.msra.gmra.mrb[4].mxu1 %vm728_vm0, %v848_v2  ;;  %3383 = vmatmul.mubr.msk.bf16.vlgmr.msra.gmra.mrb[0].mxu0 %vm728_vm0, %v848_v2 }
 0x24b   : > { %3387 = vmatpush3.bf16.msra.mxu1 %v3566_v42  ;;  %3394 = vmatprep.mubr.msk.bf16.mxu1 %vm728_vm0, %v847_v3 }
 0x24c   : > { %3388 = vmatprep.subr.bf16.mxu1 %v3567_v4 }
 0x24f   : > { %3389 = vmatpush3.bf16.msra.mxu1 %v3567_v4 }
 0x250   : > { %3390 = vmatprep.subr.bf16.mxu1 %v3568_v5 }
 0x253   : > { %3391 = vmatpush3.bf16.msra.mxu1 %v3568_v5 }
 0x254   : > { %3392 = vmatprep.subr.bf16.mxu1 %v3569_v6 }
 0x257   : > { %3393 = vmatpush3.bf16.msra.mxu1 %v3569_v6 }
 0x25a   : > { %3395 = vmatmul.mubr.msk.bf16.vlgmr.msra.gmra.mrb[8].mxu1 %vm728_vm0, %v848_v2 }
 0x31d   : > { %v3372_v7 = vpop.f32.mrb[4].mxu1  ;;  %v3384_v8 = vpop.f32.mrb[0].mxu0 }
 0x31e   : > { %v928_v13 = vpop.f32.mrb[5].mxu1  ;;  %v1017_v14 = vpop.f32.mrb[1].mxu0  ;;  %v1026_v18 = vadd.f32 %v3384_v8, %v3012_v10  ;;  %v937_v33 = vadd.f32 %v3372_v7, %v3005_v11 }
 0x31f   : > { %v3373_v15 = vpop.f32.mrb[6].mxu1  ;;  %v3385_v17 = vpop.f32.mrb[2].mxu0  ;;  %v929_v21 = vadd.f32 %v3005_v11, %v928_v13  ;;  %v1018_v22 = vadd.f32 %v3012_v10, %v1017_v14  ;;  %v3570_v13 = vld [vmem:[%s4513_s11] sm:$0xff]  }
 0x320   : > { %v931_v19 = vpop.f32.mrb[7].mxu1  ;;  %v1020_v20 = vpop.f32.mrb[3].mxu0  ;;  %v1032_v27 = vpack.c.bf16 %v1026_v18, %v1026_v18  ;;  %v943_v39 = vpack.c.bf16 %v937_v33, %v937_v33 }
 0x321   : > { %v932_v23 = vadd.f32 %v3005_v11, %v931_v19  ;;  %v1021_v24 = vadd.f32 %v3012_v10, %v1020_v20 }
 0x322   : > { %v1132_v29 = vsel %vm728_vm0, %v1032_v27, 0 }
 0x323   : > { %v942_v25 = vpack.c.bf16 %v932_v23, %v929_v21  ;;  %v1031_v26 = vpack.c.bf16 %v1021_v24, %v1018_v22 }
 0x325   : > { %3502 = vmatprep.subr.msk.bf16.mxu0 %vm728_vm0, %v1031_v26  ;;  %3402 = vmatprep.mubr.msk.bf16.mxu0 %vm728_vm0, %v942_v25  ;;  %v1129_v28 = vsel %vm728_vm0, %v1031_v26, 0  ;;  %v3571_v26 = vld [vmem:[%s4513_s11 + $0x8] sm:$0xff]  }
 0x326   : > { %3399 = vmatpush3.bf16.xpose.msra.mxu0 %v1129_v28  ;;  %v3573_v28 = vld [vmem:[%s4513_s11 + $0x18] sm:$0xff]  }
 0x327   : > { %3503 = vmatprep.subr.msk.bf16.mxu0 %vm728_vm0, %v1032_v27  ;;  %v3572_v27 = vld [vmem:[%s4513_s11 + $0x10] sm:$0xff]  }
 0x32d   : > { %v3396_v30 = vpop.f32.mrb[8].mxu1 }
 0x32e   : > { %v1106_v32 = vpop.f32.mrb[9].mxu1  ;;  %3401 = vmatpush3.bf16.xpose.msra.mxu0 %v1132_v29  ;;  %v1115_v36 = vadd.f32 %v3396_v30, %v3019_v31 }
 0x32f   : > { %v3397_v34 = vpop.f32.mrb[10].mxu1  ;;  %v1107_v37 = vadd.f32 %v3019_v31, %v1106_v32 }
 0x330   : > { %v1109_v35 = vpop.f32.mrb[11].mxu1  ;;  %v1121_v41 = vpack.c.bf16 %v1115_v36, %v1115_v36 }
 0x331   : > { %v1110_v38 = vadd.f32 %v3019_v31, %v1109_v35  ;;  %v3030_v35 = vld [vmem:[%s4514_s12] ss:$0 sm:$0xff] }
 0x332   : > { %v1232_v42 = vsel %vm1230_vm1, %v1121_v41, 0 }
 0x333   : > { %v1120_v40 = vpack.c.bf16 %v1110_v38, %v1107_v37 }
 0x335   : > { %3406 = vmatprep.subr.bf16.mxu1 %v1120_v40  ;;  %3403 = vmatmul.mubr.msk.bf16.vlgmr.msra.gmra.mrb[4].mxu0 %vm728_vm0, %v943_v39 }
 0x336   : > { %3407 = vmatpush3.bf16.msra.mxu1 %v1120_v40 }
 0x337   : > { %3504 = vmatprep.subr.msk.bf16.mxu1 %vm1230_vm1, %v1121_v41 }
 0x33a   : > { %3409 = vmatpush3.bf16.msra.mxu1 %v1232_v42 }
 0x33b   : > { %3414 = vmatprep.subr.bf16.mxu1 %v3570_v13 }
 0x408   : > { %v3404_v45 = vpop.f32.mrb[4].mxu0 }
 0x409   : > { %v1168_v46 = vpop.f32.mrb[5].mxu0  ;;  %v1184_v49 = vmul.f32 0.125, %v3404_v45 }
 0x40a   : > { %v1182_v50 = vmul.f32 0.125, %v1168_v46  ;;  %v3405_v51 = vpop.f32.mrb[6].mxu0 }
 0x40b   : > { %v1171_v52 = vpop.f32.mrb[7].mxu0  ;;  %v1187_v57 = vadd.f32 %v1184_v49, %v4068_v48 }
 0x40c   : > { %v1183_v53 = vmul.f32 0.125, %v1171_v52  ;;  %v1185_v54 = vadd.f32 %v1182_v50, %v4068_v48 }
 0x40d   : > { %v1195_v59 = vsel %vm1188_vm3, %v1187_v57, -inf }
 0x40e   : > { %v1189_v55 = vsel %vm1188_vm3, %v1185_v54, -inf  ;;  %v1186_v56 = vadd.f32 %v1183_v53, %v4068_v48 }
 0x40f   : > { %1190 = vmax.xlane.f32.xlu0 %v1189_v55 }
 0x410   : > { %v1192_v58 = vsel %vm1188_vm3, %v1186_v56, -inf }
 0x411   : > { %1193 = vmax.xlane.f32.xlu1 %v1192_v58 }
 0x413   : > { %1196 = vmax.xlane.f32.xlu0 %v1195_v59 }
 0x49c   : > { %v1191_v60 = vpop.xlane.xlu0 %1190 }
 0x49d   : > { %v1198_v61 = vsub.f32 %v1185_v54, %v1191_v60 }
 0x49e   : > { %v1194_v62 = vpop.xlane.xlu1 %1193 }
 0x49f   : > { %v1201_v63 = vmul.f32 1.442695, %v1198_v61  ;;  %v1199_v0 = vsub.f32 %v1186_v56, %v1194_v62 }
 0x4a0   : > { %v1197_v1 = vpop.xlane.xlu0 %1196 }
 0x4a1   : > { %3656 = vpow2.f32 %v1201_v63  ;;  %v1203_v2 = vmul.f32 1.442695, %v1199_v0  ;;  %v1200_v3 = vsub.f32 %v1187_v57, %v1197_v1  ;;  %v3576_v63 = vld [vmem:[%s4517_s15 + $0x4] ss:$8 sps:$4 sm:$0xff]   ;;  %v3574_v0 = vld [vmem:[%s4517_s15] ss:$8 sps:$4 sm:$0xff]  }
 0x4a2   : > { %1507 = vmatprep.subr.bf16.mxu0 %v3576_v63  ;;  %v3579_v1 = vld [vmem:[%s4517_s15 + $0x14] ss:$8 sps:$4 sm:$0xff]  }
 0x4a3   : > { %3658 = vpow2.f32 %v1203_v2  ;;  %v1205_v4 = vmul.f32 1.442695, %v1200_v3  ;;  %1508 = vmatpush1.bf16.msra.mxu0 %v3574_v0  ;;  %v3577_v2 = vld [vmem:[%s4517_s15 + $0x10] ss:$8 sps:$4 sm:$0xff]   ;;  %v3582_v3 = vld [vmem:[%s4517_s15 + $0x24] ss:$8 sps:$4 sm:$0xff]  }
 0x4a4   : > { %1509 = vmatprep.subr.bf16.mxu0 %v3579_v1 }
 0x4a5   : > { %3660 = vpow2.f32 %v1205_v4  ;;  %v3580_v4 = vld [vmem:[%s4517_s15 + $0x20] ss:$8 sps:$4 sm:$0xff]  }
 0x4a7   : > { %1510 = vmatpush1.bf16.msra.mxu0 %v3577_v2 }
 0x4a8   : > { %1511 = vmatprep.subr.bf16.mxu0 %v3582_v3 }
 0x4ab   : > { %v3657_v5 = vpop.eup %3656  ;;  %1512 = vmatpush1.bf16.msra.mxu0 %v3580_v4 }
 0x4ac   : > { %v1207_v6 = vsel %vm1188_vm3, %v3657_v5, 0.0 }
 0x4ad   : > { %v3659_v7 = vpop.eup %3658  ;;  %1208 = vadd.xlane.f32.xlu1 %v1207_v6  ;;  %v3585_v6 = vld [vmem:[%s4517_s15 + $0x34] ss:$8 sps:$4 sm:$0xff]  }
 0x4ae   : > { %v1210_v8 = vsel %vm1188_vm3, %v3659_v7, 0.0  ;;  %1513 = vmatprep.subr.bf16.mxu0 %v3585_v6 }
 0x4af   : > { %v3661_v10 = vpop.eup %3660  ;;  %1211 = vadd.xlane.f32.xlu0 %v1210_v8 }
 0x4b0   : > { %v1213_v11 = vsel %vm1188_vm3, %v3661_v10, 0.0 }
 0x4b1   : > { %1214 = vadd.xlane.f32.xlu1 %v1213_v11 }
 0x53a   : > { %v1209_v14 = vpop.xlane.xlu1 %1208 }
 0x53b   : > { %3662 = vrcp.f32 %v1209_v14 }
 0x53c   : > { %v1212_v15 = vpop.xlane.xlu0 %1211 }
 0x53d   : > { %3664 = vrcp.f32 %v1212_v15 }
 0x53e   : > { %v1215_v17 = vpop.xlane.xlu1 %1214 }
 0x53f   : > { %3666 = vrcp.f32 %v1215_v17 }
 0x545   : > { %v3663_v18 = vpop.eup %3662 }
 0x546   : > { %v1219_v20 = vmul.f32 %v3663_v18, %v3657_v5  ;;  %v3583_v5 = vld [vmem:[%s4517_s15 + $0x30] ss:$8 sps:$4 sm:$0xff]  }
 0x547   : > { %v3665_v19 = vpop.eup %3664  ;;  %1514 = vmatpush1.bf16.msra.mxu0 %v3583_v5 }
 0x548   : > { %v1220_v21 = vmul.f32 %v3665_v19, %v3659_v7  ;;  %v3789_v7 = vmov 0  }
 0x549   : > { %v3667_v22 = vpop.eup %3666  ;;  %1539 = vmatprep.mubr.bf16.mxu0 %v3789_v7 }
 0x54a   : > { %v1221_v23 = vmul.f32 %v3667_v22, %v3661_v10  ;;  %v1222_v24 = vpack.c.bf16 %v1220_v21, %v1219_v20  ;;  %v3037_v21 = vld [vmem:[%s4515_s13] ss:$0 sm:$0xff] }
 0x54c   : > { %3410 = vmatprep.mubr.msk.bf16.mxu1 %vm1188_vm3, %v1222_v24  ;;  %v1223_v25 = vpack.c.bf16 %v1221_v23, %v1221_v23 }
 0x54e   : > { %3411 = vmatmul.mubr.msk.bf16.vlgmr.msra.gmra.mrb[12].mxu1 %vm1188_vm3, %v1223_v25 }
 0x54f   : > { %3415 = vmatpush3.bf16.msra.mxu1 %v3570_v13 }
 0x550   : > { %3416 = vmatprep.subr.bf16.mxu1 %v3571_v26 }
 0x553   : > { %3417 = vmatpush3.bf16.msra.mxu1 %v3571_v26 }
 0x554   : > { %3418 = vmatprep.subr.bf16.mxu1 %v3572_v27 }
 0x557   : > { %3419 = vmatpush3.bf16.msra.mxu1 %v3572_v27  ;;  %v3038_v27 = vld [vmem:[%s4516_s14] ss:$0 sm:$0xff] }
 0x558   : > { %3420 = vmatprep.subr.bf16.mxu1 %v3573_v28 }
 0x55b   : > { %3421 = vmatpush3.bf16.msra.mxu1 %v3573_v28 }
 0x621   : > { %v3412_v29 = vpop.f32.mrb[12].mxu1 }
 0x622   : > { %v1268_v30 = vpop.f32.mrb[13].mxu1  ;;  %v1283_v34 = vpack.c.bf16 %v3412_v29, %v3412_v29 }
 0x623   : > { %v3413_v31 = vpop.f32.mrb[14].mxu1 }
 0x624   : > { %v1271_v32 = vpop.f32.mrb[15].mxu1 }
 0x625   : > { %v1282_v33 = vpack.c.bf16 %v1271_v32, %v1268_v30 }
 0x627   : > { %3422 = vmatprep.mubr.msk.bf16.mxu1 %vm728_vm0, %v1282_v33 }
 0x628   : > { %3423 = vmatmul.mubr.msk.bf16.vlgmr.msra.gmra.mrb[16].mxu1 %vm728_vm0, %v1283_v34 }
 0x6fb   : > { %v3424_v36 = vpop.f32.mrb[16].mxu1 }
 0x6fc   : > { %v1363_v37 = vpop.f32.mrb[17].mxu1  ;;  %v1372_v38 = vadd.f32 %v3424_v36, %v3030_v35  ;;  %v3586_v36 = vld [vmem:[%s4519_s17 + $0x40] sm:$0xff]  }
 0x6fd   : > { %v1364_v39 = vadd.f32 %v3030_v35, %v1363_v37  ;;  %v3425_v40 = vpop.f32.mrb[18].mxu1  ;;  %v3587_v37 = vld [vmem:[%s4519_s17] sm:$0xff]   ;;  %3257 = vmatprep.subr.bf16.mxu1 %v3586_v36 }
 0x6fe   : > { %v1366_v41 = vpop.f32.mrb[19].mxu1  ;;  %v4102_v45 = vadd.f32 %v1372_v38, %v3981_v9  ;;  %3258 = vmatpush3.bf16.msra.mxu1 %v3587_v37  ;;  %v3588_v38 = vld [vmem:[%s4519_s17 + $0x48] sm:$0xff]   ;;  %v3590_v40 = vld [vmem:[%s4519_s17 + $0x50] sm:$0xff]  }
 0x6ff   : > { %v4099_v42 = vadd.f32 %v1364_v39, %v3986_v12  ;;  %v1367_v44 = vadd.f32 %v3030_v35, %v1366_v41  ;;  %v3589_v39 = vld [vmem:[%s4519_s17 + $0x8] sm:$0xff]   ;;  %3259 = vmatprep.subr.bf16.mxu1 %v3588_v38  ;;  %v3591_v41 = vld [vmem:[%s4519_s17 + $0x10] sm:$0xff]  }
 0x700   : > { %v1388_v50 = vsel %vm728_vm0, %v4102_v45, 0.0 }
 0x701   : > { %v4105_v46 = vadd.f32 %v1367_v44, %v3990_v16  ;;  %v1382_v47 = vsel %vm728_vm0, %v4099_v42, 0.0  ;;  %v3592_v44 = vld [vmem:[%s4519_s17 + $0x58] sm:$0xff]  }
 0x702   : > { %1383 = vadd.xlane.f32.xlu0 %v1382_v47  ;;  %3260 = vmatpush3.bf16.msra.mxu1 %v3589_v39  ;;  %v3593_v47 = vld [vmem:[%s4519_s17 + $0x18] sm:$0xff]  }
 0x703   : > { %v1385_v49 = vsel %vm728_vm0, %v4105_v46, 0.0  ;;  %3261 = vmatprep.subr.bf16.mxu1 %v3590_v40 }
 0x704   : > { %1386 = vadd.xlane.f32.xlu1 %v1385_v49  ;;  %v3594_v49 = vld [vmem:[%s4519_s17 + $0x60] sm:$0xff]  }
 0x706   : > { %1389 = vadd.xlane.f32.xlu0 %v1388_v50  ;;  %3262 = vmatpush3.bf16.msra.mxu1 %v3591_v41  ;;  %v3595_v50 = vld [vmem:[%s4519_s17 + $0x20] sm:$0xff]  }
 0x707   : > { %3263 = vmatprep.subr.bf16.mxu1 %v3592_v44 }
 0x70a   : > { %3264 = vmatpush3.bf16.msra.mxu1 %v3593_v47 }
 0x70b   : > { %3265 = vmatprep.subr.bf16.mxu1 %v3594_v49 }
 0x70e   : > { %3266 = vmatpush3.bf16.msra.mxu1 %v3595_v50 }
 0x78f   : > { %v1384_v12 = vpop.xlane.xlu0 %1383 }
 0x790   : > { %v1391_v51 = vmul.f32 0.015625, %v1384_v12  ;;  %v3596_v12 = vld [vmem:[%s4519_s17 + $0x68] sm:$0xff]  }
 0x791   : > { %v1387_v52 = vpop.xlane.xlu1 %1386  ;;  %3267 = vmatprep.subr.bf16.mxu1 %v3596_v12 }
 0x792   : > { %v1394_v9 = vsub.f32 %v4099_v42, %v1391_v51  ;;  %v1392_v53 = vmul.f32 0.015625, %v1387_v52  ;;  %v3597_v51 = vld [vmem:[%s4519_s17 + $0x28] sm:$0xff]   ;;  %v3598_v52 = vld [vmem:[%s4519_s17 + $0x70] sm:$0xff]  }
 0x793   : > { %v1390_v16 = vpop.xlane.xlu0 %1389  ;;  %3268 = vmatpush3.bf16.msra.mxu1 %v3597_v51 }
 0x794   : > { %v1395_v54 = vsub.f32 %v4105_v46, %v1392_v53  ;;  %v1393_v55 = vmul.f32 0.015625, %v1390_v16  ;;  %v1397_v56 = vmul.f32 %v1394_v9, %v1394_v9  ;;  %3269 = vmatprep.subr.bf16.mxu1 %v3598_v52  ;;  %v3600_v53 = vld [vmem:[%s4519_s17 + $0x78] sm:$0xff]  }
 0x795   : > { %v3601_v16 = vld [vmem:[%s4519_s17 + $0x38] sm:$0xff]  }
 0x796   : > { %v1396_v57 = vsub.f32 %v4102_v45, %v1393_v55  ;;  %v1400_v58 = vsel %vm728_vm0, %v1397_v56, 0.0  ;;  %v1398_v59 = vmul.f32 %v1395_v54, %v1395_v54  ;;  %v1449_v56 = vld [vmem:[%s4518_s16] sm:$0x3] }
 0x797   : > { %1401 = vadd.xlane.f32.xlu1 %v1400_v58 }
 0x798   : > { %v1403_v60 = vsel %vm728_vm0, %v1398_v59, 0.0  ;;  %v1399_v61 = vmul.f32 %v1396_v57, %v1396_v57 }
 0x799   : > { %1404 = vadd.xlane.f32.xlu0 %v1403_v60 }
 0x79a   : > { %v1406_v62 = vsel %vm728_vm0, %v1399_v61, 0.0 }
 0x79b   : > { %1407 = vadd.xlane.f32.xlu1 %v1406_v62 }
 0x824   : > { %v1402_v8 = vpop.xlane.xlu1 %1401 }
 0x825   : > { %v1409_v10 = vmul.f32 0.015625, %v1402_v8 }
 0x826   : > { %v1405_v11 = vpop.xlane.xlu0 %1404 }
 0x827   : > { %v1412_v13 = vadd.f32 1e-05, %v1409_v10  ;;  %v1410_v14 = vmul.f32 0.015625, %v1405_v11 }
 0x828   : > { %v1408_v15 = vpop.xlane.xlu1 %1407 }
 0x829   : > { %3668 = vrsqrt.f32 %v1412_v13  ;;  %v1413_v17 = vadd.f32 1e-05, %v1410_v14  ;;  %v1411_v18 = vmul.f32 0.015625, %v1408_v15 }
 0x82b   : > { %3670 = vrsqrt.f32 %v1413_v17  ;;  %v1414_v19 = vadd.f32 1e-05, %v1411_v18 }
 0x82d   : > { %3672 = vrsqrt.f32 %v1414_v19 }
 0x833   : > { %v3669_v20 = vpop.eup %3668 }
 0x834   : > { %v1418_v22 = vmul.f32 %v3669_v20, %v1394_v9  ;;  %v3599_v9 = vld [vmem:[%s4519_s17 + $0x30] sm:$0xff]  }
 0x835   : > { %v3671_v23 = vpop.eup %3670  ;;  %3270 = vmatpush3.bf16.msra.mxu1 %v3599_v9 }
 0x836   : > { %v1427_v24 = vmul.f32 %v3037_v21, %v1418_v22  ;;  %v1419_v25 = vmul.f32 %v3671_v23, %v1395_v54  ;;  %3271 = vmatprep.subr.bf16.mxu1 %v3600_v53  ;;  %v4202_v54 = vshrl.u32 %v783_v43, 7 }
 0x837   : > { %v3673_v26 = vpop.eup %3672 }
 0x838   : > { %v1428_v28 = vmul.f32 %v3037_v21, %v1419_v25  ;;  %v1420_v29 = vmul.f32 %v3673_v26, %v1396_v57  ;;  %v1436_v30 = vadd.f32 %v3038_v27, %v1427_v24  ;;  %v1453_v55 = vsub.s32 0, %v4202_v54 }
 0x839   : > { %3272 = vmatpush3.bf16.msra.mxu1 %v3601_v16  ;;  %v1457_v57 = vsub.s32 1, %v4202_v54 }
 0x83a   : > { %v1437_v31 = vadd.f32 %v3038_v27, %v1428_v28  ;;  %v1429_v33 = vmul.f32 %v3037_v21, %v1420_v29  ;;  %v1454_v58 = vrot.slane %v1449_v56, %v1453_v55 }
 0x83b   : > { %v1458_v59 = vrot.slane %v1449_v56, %v1457_v57 }
 0x83c   : > { %v1439_v32 = vpack.c.bf16 %v1437_v31, %v1436_v30  ;;  %v1438_v34 = vadd.f32 %v3038_v27, %v1429_v33 }
 0x83e   : > { %3047 = vmatmul.mubr.msk.bf16.vlgmr.msra.gmra.mrb[8].mxu0 %vm728_vm0, %v1439_v32  ;;  %v1440_v35 = vpack.c.bf16 %v1438_v34, %v1438_v34 }
 0x83f   : > { %1549 = vmatprep.mubr.bf16.mxu0 %v3789_v7 }
 0x846   : > { %3048 = vmatmul.mubr.msk.bf16.gmra.mrb[12].mxu0 %vm728_vm0, %v1440_v35 }
 0x911   : > { %v1541_v60 = vpop.f32.mrb[8].mxu0 }
 0x912   : > { %v1542_v61 = vadd.f32 %v1541_v60, %v1454_v58  ;;  %v1543_v62 = vpop.f32.mrb[9].mxu0 }
 0x913   : > { %v1544_v63 = vadd.f32 %v1543_v62, %v1458_v59  ;;  %v1545_v43 = vpop.f32.mrb[10].mxu0 }
 0x914   : > { %v1558_v0 = vmul.f32 %v1542_v61, %v1542_v61  ;;  %v1546_v1 = vadd.f32 %v1545_v43, %v1454_v58  ;;  %v1547_v2 = vpop.f32.mrb[11].mxu0 }
 0x915   : > { %v1559_v3 = vmul.f32 %v1544_v63, %v1544_v63  ;;  %v1548_v4 = vadd.f32 %v1547_v2, %v1458_v59 }
 0x916   : > { %v1564_v5 = vmul.f32 %v1558_v0, %v1542_v61  ;;  %v1560_v6 = vmul.f32 %v1546_v1, %v1546_v1 }
 0x917   : > { %v1565_v8 = vmul.f32 %v1559_v3, %v1544_v63  ;;  %v1561_v10 = vmul.f32 %v1548_v4, %v1548_v4 }
 0x918   : > { %v1570_v11 = vmul.f32 0.044715, %v1564_v5  ;;  %v1566_v13 = vmul.f32 %v1560_v6, %v1546_v1 }
 0x919   : > { %v1571_v14 = vmul.f32 0.044715, %v1565_v8  ;;  %v1567_v15 = vmul.f32 %v1561_v10, %v1548_v4  ;;  %v1551_v17 = vpop.f32.mrb[12].mxu0 }
 0x91a   : > { %v1576_v18 = vadd.f32 %v1570_v11, %v1542_v61  ;;  %v1572_v19 = vmul.f32 0.044715, %v1566_v13  ;;  %v1552_v20 = vadd.f32 %v1551_v17, %v1454_v58  ;;  %v1553_v21 = vpop.f32.mrb[13].mxu0 }
 0x91b   : > { %v1577_v22 = vadd.f32 %v1571_v14, %v1544_v63  ;;  %v1573_v23 = vmul.f32 0.044715, %v1567_v15  ;;  %v1554_v24 = vadd.f32 %v1553_v21, %v1458_v59  ;;  %v1555_v25 = vpop.f32.mrb[14].mxu0 }
 0x91c   : > { %v1582_v26 = vmul.f32 0.7978846, %v1576_v18  ;;  %v1578_v27 = vadd.f32 %v1572_v19, %v1546_v1  ;;  %v1562_v28 = vmul.f32 %v1552_v20, %v1552_v20  ;;  %v1556_v29 = vpop.f32.mrb[15].mxu0 }
 0x91d   : > { %v1583_v30 = vmul.f32 0.7978846, %v1577_v22  ;;  %v1579_v31 = vadd.f32 %v1573_v23, %v1548_v4  ;;  %v1563_v32 = vmul.f32 %v1554_v24, %v1554_v24 }
 0x91e   : > { %3674 = vtanh.f32 %v1582_v26  ;;  %v1584_v33 = vmul.f32 0.7978846, %v1578_v27  ;;  %v1568_v34 = vmul.f32 %v1562_v28, %v1552_v20 }
 0x91f   : > { %3676 = vtanh.f32 %v1583_v30  ;;  %v1585_v35 = vmul.f32 0.7978846, %v1579_v31  ;;  %v1569_v36 = vmul.f32 %v1563_v32, %v1554_v24 }
 0x920   : > { %3678 = vtanh.f32 %v1584_v33  ;;  %v1574_v37 = vmul.f32 0.044715, %v1568_v34 }
 0x921   : > { %3680 = vtanh.f32 %v1585_v35  ;;  %v1575_v38 = vmul.f32 0.044715, %v1569_v36 }
 0x922   : > { %v1580_v39 = vadd.f32 %v1574_v37, %v1552_v20 }
 0x923   : > { %v1581_v40 = vadd.f32 %v1575_v38, %v1554_v24 }
 0x924   : > { %v1586_v41 = vmul.f32 0.7978846, %v1580_v39 }
 0x925   : > { %v1587_v44 = vmul.f32 0.7978846, %v1581_v40 }
 0x926   : > { %3682 = vtanh.f32 %v1586_v41 }
 0x927   : > { %3684 = vtanh.f32 %v1587_v44 }
 0x928   : > { %v3675_v47 = vpop.eup %3674 }
 0x929   : > { %v3677_v49 = vpop.eup %3676  ;;  %v1594_v50 = vadd.f32 1.0, %v3675_v47 }
 0x92a   : > { %v3679_v12 = vpop.eup %3678  ;;  %v1595_v51 = vadd.f32 1.0, %v3677_v49 }
 0x92b   : > { %v3681_v52 = vpop.eup %3680  ;;  %v1600_v9 = vmul.f32 0.5, %v1594_v50  ;;  %v1596_v53 = vadd.f32 1.0, %v3679_v12 }
 0x92c   : > { %v1597_v16 = vadd.f32 1.0, %v3681_v52  ;;  %v1601_v56 = vmul.f32 0.5, %v1595_v51  ;;  %v3602_v52 = vld [vmem:[%s4564_s5 + $0x20] sm:$0xff]  }
 0x92d   : > { %v1602_v58 = vmul.f32 0.5, %v1596_v53  ;;  %v1606_v60 = vmul.f32 %v1600_v9, %v1542_v61  ;;  %v3603_v9 = vld [vmem:[%s4511_s9 + $0x20] sm:$0xff]   ;;  %3426 = vmatprep.subr.bf16.mxu0 %v3602_v52  ;;  %v3604_v53 = vld [vmem:[%s4564_s5 + $0x28] sm:$0xff]  }
 0x92e   : > { %v1603_v59 = vmul.f32 0.5, %v1597_v16  ;;  %v1607_v0 = vmul.f32 %v1601_v56, %v1544_v63  ;;  %v3049_v63 = vld [vmem:[%s4520_s18] ss:$0 sm:$0xff]  ;;  %3427 = vmatpush3.bf16.msra.mxu0 %v3602_v52  ;;  %3450 = vmatprep.subr.bf16.mxu1 %v3603_v9  ;;  %v3605_v16 = vld [vmem:[%s4511_s9 + $0x28] sm:$0xff]   ;;  %v3606_v56 = vld [vmem:[%s4564_s5 + $0x30] sm:$0xff]  }
 0x92f   : > { %v1608_v62 = vmul.f32 %v1602_v58, %v1546_v1  ;;  %3428 = vmatprep.subr.bf16.mxu0 %v3604_v53  ;;  %v3607_v58 = vld [vmem:[%s4511_s9 + $0x30] sm:$0xff]  }
 0x930   : > { %v3683_v43 = vpop.eup %3682  ;;  %v1609_v2 = vmul.f32 %v1603_v59, %v1548_v4  ;;  %v3608_v59 = vld [vmem:[%s4564_s5 + $0x38] sm:$0xff]   ;;  %s3728_s5 = sshll.u32 %s3792_s4, 4  ;;  %s3729_s5 = int_to_ptr.vmem [resolvable:$false] %s3728_s5 }
 0x931   : > { %v3685_v3 = vpop.eup %3684  ;;  %v1612_v5 = vpack.c.bf16 %v1608_v62, %v1606_v60  ;;  %v1598_v6 = vadd.f32 1.0, %v3683_v43  ;;  %v3609_v60 = vld [vmem:[%s4511_s9 + $0x38] sm:$0xff]   ;;  %v3610_v62 = vld [vmem:[%s4509_s7 + $0x20] sm:$0xff]   ;;  %p3731_p0 = scmp.lt.s32.totalorder %s4462_s30, %s3729_s5 }
 0x932   : > { %v1613_v8 = vpack.c.bf16 %v1609_v2, %v1607_v0  ;;  %v1599_v10 = vadd.f32 1.0, %v3685_v3  ;;  %3429 = vmatpush3.bf16.msra.mxu0 %v3604_v53 }
 0x933   : > { %v1604_v11 = vmul.f32 0.5, %v1598_v6  ;;  %3430 = vmatprep.subr.bf16.mxu0 %v3606_v56 }
 0x934   : > { %1783 = vmatprep.mubr.bf16.mxu1 %v1613_v8  ;;  %v1605_v13 = vmul.f32 0.5, %v1599_v10 }
 0x935   : > { %1784 = vmatmul.mubr.bf16.vlgmr.msra.gmra.mrb[20].mxu1 %v1612_v5  ;;  %v1610_v15 = vmul.f32 %v1604_v11, %v1552_v20 }
 0x936   : > { %v1611_v14 = vmul.f32 %v1605_v13, %v1554_v24  ;;  %3451 = vmatpush3.bf16.msra.mxu1 %v3603_v9  ;;  %3431 = vmatpush3.bf16.msra.mxu0 %v3606_v56  ;;  %v3095_v9 = vld [vmem:[%s4510_s8 + $0x1] ss:$0 sm:$0xff] }
 0x937   : > { %v1614_v18 = vpack.c.bf16 %v1610_v15, %v1610_v15  ;;  %3452 = vmatprep.subr.bf16.mxu1 %v3605_v16  ;;  %3432 = vmatprep.subr.bf16.mxu0 %v3608_v59 }
 0x938   : > { %v1615_v17 = vpack.c.bf16 %v1611_v14, %v1611_v14  ;;  %v3068_v14 = vld [vmem:[%s4566_s1 + $0x1] ss:$0 sm:$0xff]  ;;  %s3730_s1 = scalar_lea.vmem %s3729_s5, 32 }
 0x939   : > { %p3732_p1 = scmp.lt.s32.totalorder %s3730_s1, %s3724_s27 }
 0x93a   : > { %1791 = vmatprep.mubr.bf16.mxu1 %v1615_v17  ;;  %3453 = vmatpush3.bf16.msra.mxu1 %v3605_v16 }
 0x93b   : > { %3454 = vmatprep.subr.bf16.mxu1 %v3607_v58  ;;  %3433 = vmatpush3.bf16.msra.mxu0 %v3608_v59  ;;  %p3733_p2 = por %p3732_p1, %p3731_p0 }
 0x93c   : > { %3438 = vmatprep.subr.bf16.mxu0 %v3610_v62 }
 0x93d   : > { %1792 = vmatmul.mubr.bf16.gmra.mrb[24].mxu1 %v1614_v18  ;;  %p3734_p3 = pnand %p3733_p2, %p3727_p13 }
 0x93e   : > { %3455 = vmatpush3.bf16.msra.mxu1 %v3607_v58 }
 0x93f   : > { %3456 = vmatprep.subr.bf16.mxu1 %v3609_v60 }
 0x942   : > { %3457 = vmatpush3.bf16.msra.mxu1 %v3609_v60 }
 0xa08   : > { %v3273_v61 = vpop.f32.mrb[20].mxu1 }
 0xa09   : > { %v3274_v1 = vpop.f32.mrb[21].mxu1 }
 0xa0a   : > { %v3275_v4 = vadd.f32 %v3274_v1, %v3273_v61  ;;  %v3276_v19 = vpop.f32.mrb[22].mxu1 }
 0xa0b   : > { %v3277_v21 = vpop.f32.mrb[23].mxu1 }
 0xa0c   : > { %v1786_v22 = vadd.f32 %v3275_v4, %v3049_v63  ;;  %v3278_v23 = vadd.f32 %v3277_v21, %v3276_v19 }
 0xa0e   : > { %v4217_v25 = vadd.f32 %v1786_v22, %v4099_v42  ;;  %v1789_v24 = vadd.f32 %v3278_v23, %v3049_v63 }
 0xa10   : > { %v4220_v20 = vadd.f32 %v1789_v24, %v4105_v46  ;;  %v3279_v26 = vpop.f32.mrb[24].mxu1  ;;  %v1806_v27 = vsel %vm728_vm0, %v4217_v25, 0.0 }
 0xa11   : > { %v3280_v28 = vpop.f32.mrb[25].mxu1  ;;  %1807 = vadd.xlane.f32.xlu0 %v1806_v27 }
 0xa12   : > { %v3281_v29 = vadd.f32 %v3280_v28, %v3279_v26  ;;  %v3282_v30 = vpop.f32.mrb[26].mxu1  ;;  %v1809_v31 = vsel %vm728_vm0, %v4220_v20, 0.0  ;;  %v3611_v28 = vld [vmem:[%s4509_s7 + $0x28] sm:$0xff]  }
 0xa13   : > { %v3283_v32 = vpop.f32.mrb[27].mxu1  ;;  %1810 = vadd.xlane.f32.xlu1 %v1809_v31  ;;  %v3613_v30 = vld [vmem:[%s4509_s7 + $0x38] sm:$0xff]  }
 0xa14   : > { %v1794_v33 = vadd.f32 %v3281_v29, %v3049_v63  ;;  %v3069_v63 = vld [vmem:[%s4568_s24 + $0x1] ss:$0 sm:$0xff]  ;;  %v3612_v29 = vld [vmem:[%s4509_s7 + $0x30] sm:$0xff]  }
 0xa16   : > { %v4227_v42 = vadd.f32 %v1794_v33, %v4102_v45  ;;  %v3111_v33 = vld [vmem:[%s4512_s10 + $0x1] ss:$0 sm:$0xff] }
 0xa18   : > { %v1812_v46 = vsel %vm728_vm0, %v4227_v42, 0.0 }
 0xa19   : > { %1813 = vadd.xlane.f32.xlu0 %v1812_v46  ;;  %v3079_v46 = vld [vmem:[%s4569_s22 + $0x1] ss:$0 sm:$0xff] }
 0xa9e   : > { %v1808_v34 = vpop.xlane.xlu0 %1807 }
 0xa9f   : > { %v1815_v35 = vmul.f32 0.015625, %v1808_v34 }
 0xaa0   : > { %v1811_v36 = vpop.xlane.xlu1 %1810 }
 0xaa1   : > { %v1818_v37 = vsub.f32 %v4217_v25, %v1815_v35  ;;  %v1816_v38 = vmul.f32 0.015625, %v1811_v36 }
 0xaa3   : > { %v1819_v39 = vsub.f32 %v4220_v20, %v1816_v38  ;;  %v1821_v40 = vmul.f32 %v1818_v37, %v1818_v37 }
 0xaa5   : > { %v1824_v41 = vsel %vm728_vm0, %v1821_v40, 0.0  ;;  %v1822_v44 = vmul.f32 %v1819_v39, %v1819_v39 }
 0xaa6   : > { %1825 = vadd.xlane.f32.xlu1 %v1824_v41  ;;  %v1814_v47 = vpop.xlane.xlu0 %1813 }
 0xaa7   : > { %v1817_v45 = vmul.f32 0.015625, %v1814_v47  ;;  %v1827_v49 = vsel %vm728_vm0, %v1822_v44, 0.0 }
 0xaa8   : > { %1828 = vadd.xlane.f32.xlu0 %v1827_v49 }
 0xaa9   : > { %v1820_v50 = vsub.f32 %v4227_v42, %v1817_v45 }
 0xaab   : > { %v1823_v12 = vmul.f32 %v1820_v50, %v1820_v50 }
 0xaad   : > { %v1830_v51 = vsel %vm728_vm0, %v1823_v12, 0.0 }
 0xaae   : > { %1831 = vadd.xlane.f32.xlu1 %v1830_v51 }
 0xb33   : > { %v1826_v43 = vpop.xlane.xlu1 %1825 }
 0xb34   : > { %v1833_v0 = vmul.f32 0.015625, %v1826_v43 }
 0xb35   : > { %v1829_v2 = vpop.xlane.xlu0 %1828 }
 0xb36   : > { %v1836_v3 = vadd.f32 1e-05, %v1833_v0  ;;  %v1834_v5 = vmul.f32 0.015625, %v1829_v2 }
 0xb38   : > { %3686 = vrsqrt.f32 %v1836_v3  ;;  %v1837_v6 = vadd.f32 1e-05, %v1834_v5 }
 0xb3a   : > { %3688 = vrsqrt.f32 %v1837_v6 }
 0xb3b   : > { %v1832_v8 = vpop.xlane.xlu1 %1831 }
 0xb3c   : > { %v1835_v10 = vmul.f32 0.015625, %v1832_v8 }
 0xb3e   : > { %v1838_v11 = vadd.f32 1e-05, %v1835_v10 }
 0xb40   : > { %3690 = vrsqrt.f32 %v1838_v11 }
 0xb42   : > { %v3687_v13 = vpop.eup %3686 }
 0xb43   : > { %v1842_v15 = vmul.f32 %v3687_v13, %v1818_v37 }
 0xb44   : > { %v3689_v17 = vpop.eup %3688 }
 0xb45   : > { %v1843_v18 = vmul.f32 %v3689_v17, %v1819_v39  ;;  %v1851_v61 = vmul.f32 %v3068_v14, %v1842_v15 }
 0xb47   : > { %v1852_v1 = vmul.f32 %v3068_v14, %v1843_v18  ;;  %v1860_v4 = vadd.f32 %v3069_v63, %v1851_v61 }
 0xb49   : > { %v1861_v19 = vadd.f32 %v3069_v63, %v1852_v1 }
 0xb4a   : > { %v3691_v21 = vpop.eup %3690 }
 0xb4b   : > { %v1844_v22 = vmul.f32 %v3691_v21, %v1820_v50  ;;  %v1863_v23 = vpack.c.bf16 %v1861_v19, %v1860_v4 }
 0xb4d   : > { %v1853_v24 = vmul.f32 %v3068_v14, %v1844_v22  ;;  %3434 = vmatprep.mubr.msk.bf16.mxu0 %vm728_vm0, %v1863_v23  ;;  %3458 = vmatprep.mubr.msk.bf16.mxu1 %vm728_vm0, %v1863_v23 }
 0xb4f   : > { %v1862_v26 = vadd.f32 %v3069_v63, %v1853_v24 }
 0xb51   : > { %v1864_v27 = vpack.c.bf16 %v1862_v26, %v1862_v26 }
 0xb53   : > { %3435 = vmatmul.mubr.msk.bf16.vlgmr.msra.gmra.mrb[16].mxu0 %vm728_vm0, %v1864_v27  ;;  %3459 = vmatmul.mubr.msk.bf16.vlgmr.msra.gmra.mrb[28].mxu1 %vm728_vm0, %v1864_v27 }
 0xb54   : > { %3439 = vmatpush3.bf16.msra.mxu0 %v3610_v62  ;;  %3446 = vmatprep.mubr.msk.bf16.mxu0 %vm728_vm0, %v1863_v23 }
 0xb55   : > { %3440 = vmatprep.subr.bf16.mxu0 %v3611_v28 }
 0xb58   : > { %3441 = vmatpush3.bf16.msra.mxu0 %v3611_v28 }
 0xb59   : > { %3442 = vmatprep.subr.bf16.mxu0 %v3612_v29 }
 0xb5c   : > { %3443 = vmatpush3.bf16.msra.mxu0 %v3612_v29 }
 0xb5d   : > { %3444 = vmatprep.subr.bf16.mxu0 %v3613_v30 }
 0xb60   : > { %3445 = vmatpush3.bf16.msra.mxu0 %v3613_v30 }
 0xb63   : > { %3447 = vmatmul.mubr.msk.bf16.vlgmr.msra.gmra.mrb[20].mxu0 %vm728_vm0, %v1864_v27 }
 0xc26   : > { %v3436_v31 = vpop.f32.mrb[16].mxu0  ;;  %v3460_v32 = vpop.f32.mrb[28].mxu1 }
 0xc27   : > { %v1946_v34 = vpop.f32.mrb[17].mxu0  ;;  %v2128_v35 = vpop.f32.mrb[29].mxu1  ;;  %v2137_v38 = vadd.f32 %v3460_v32, %v3111_v33  ;;  %v1955_v3 = vadd.f32 %v3436_v31, %v3079_v46 }
 0xc28   : > { %v3437_v36 = vpop.f32.mrb[18].mxu0  ;;  %v3461_v37 = vpop.f32.mrb[30].mxu1  ;;  %v1947_v41 = vadd.f32 %v3079_v46, %v1946_v34  ;;  %v2129_v44 = vadd.f32 %v3111_v33, %v2128_v35  ;;  %v3614_v34 = vld [vmem:[%s4513_s11 + $0x20] sm:$0xff]   ;;  %v3615_v35 = vld [vmem:[%s4513_s11 + $0x28] sm:$0xff]  }
 0xc29   : > { %v1949_v39 = vpop.f32.mrb[19].mxu0  ;;  %v2131_v40 = vpop.f32.mrb[31].mxu1  ;;  %v2143_v12 = vpack.c.bf16 %v2137_v38, %v2137_v38  ;;  %v1961_v5 = vpack.c.bf16 %v1955_v3, %v1955_v3  ;;  %v3616_v36 = vld [vmem:[%s4513_s11 + $0x30] sm:$0xff]  }
 0xc2a   : > { %v1950_v47 = vadd.f32 %v3079_v46, %v1949_v39  ;;  %v2132_v45 = vadd.f32 %v3111_v33, %v2131_v40 }
 0xc2b   : > { %v2252_v51 = vsel %vm1230_vm1, %v2143_v12, 0 }
 0xc2c   : > { %v1960_v49 = vpack.c.bf16 %v1950_v47, %v1947_v41  ;;  %v2142_v50 = vpack.c.bf16 %v2132_v45, %v2129_v44 }
 0xc2e   : > { %3466 = vmatprep.mubr.msk.bf16.mxu0 %vm728_vm0, %v1960_v49  ;;  %3470 = vmatprep.subr.bf16.mxu1 %v2142_v50 }
 0xc2f   : > { %3471 = vmatpush3.bf16.msra.mxu1 %v2142_v50 }
 0xc30   : > { %3507 = vmatprep.subr.msk.bf16.mxu1 %vm1230_vm1, %v2143_v12 }
 0xc33   : > { %3473 = vmatpush3.bf16.msra.mxu1 %v2252_v51  ;;  %v3617_v51 = vld [vmem:[%s4513_s11 + $0x38] sm:$0xff]  }
 0xc36   : > { %v3448_v52 = vpop.f32.mrb[20].mxu0 }
 0xc37   : > { %v2037_v53 = vpop.f32.mrb[21].mxu0  ;;  %v2046_v58 = vadd.f32 %v3448_v52, %v3095_v9 }
 0xc38   : > { %v3449_v16 = vpop.f32.mrb[22].mxu0  ;;  %v2038_v59 = vadd.f32 %v3095_v9, %v2037_v53 }
 0xc39   : > { %v2040_v56 = vpop.f32.mrb[23].mxu0  ;;  %v2052_v43 = vpack.c.bf16 %v2046_v58, %v2046_v58 }
 0xc3a   : > { %v2041_v60 = vadd.f32 %v3095_v9, %v2040_v56 }
 0xc3b   : > { %v2154_v2 = vsel %vm728_vm0, %v2052_v43, 0 }
 0xc3c   : > { %v2051_v62 = vpack.c.bf16 %v2041_v60, %v2038_v59  ;;  %v3131_v59 = vld [vmem:[%s4514_s12 + $0x1] ss:$0 sm:$0xff] }
 0xc3e   : > { %3505 = vmatprep.subr.msk.bf16.mxu0 %vm728_vm0, %v2051_v62  ;;  %v2151_v0 = vsel %vm728_vm0, %v2051_v62, 0 }
 0xc3f   : > { %3463 = vmatpush3.bf16.xpose.msra.mxu0 %v2151_v0 }
 0xc40   : > { %3506 = vmatprep.subr.msk.bf16.mxu0 %vm728_vm0, %v2052_v43 }
 0xc47   : > { %3465 = vmatpush3.bf16.xpose.msra.mxu0 %v2154_v2 }
 0xc48   : > { %3478 = vmatprep.subr.bf16.mxu0 %v3614_v34 }
 0xc4e   : > { %3467 = vmatmul.mubr.msk.bf16.vlgmr.msra.gmra.mrb[24].mxu0 %vm728_vm0, %v1961_v5 }
 0xc4f   : > { %3479 = vmatpush3.bf16.msra.mxu0 %v3614_v34 }
 0xc50   : > { %3480 = vmatprep.subr.bf16.mxu0 %v3615_v35 }
 0xc53   : > { %3481 = vmatpush3.bf16.msra.mxu0 %v3615_v35 }
 0xc54   : > { %3482 = vmatprep.subr.bf16.mxu0 %v3616_v36 }
 0xc57   : > { %3483 = vmatpush3.bf16.msra.mxu0 %v3616_v36 }
 0xc58   : > { %3484 = vmatprep.subr.bf16.mxu0 %v3617_v51 }
 0xc5b   : > { %3485 = vmatpush3.bf16.msra.mxu0 %v3617_v51 }
 0xd21   : > { %v3468_v6 = vpop.f32.mrb[24].mxu0 }
 0xd22   : > { %v2190_v8 = vpop.f32.mrb[25].mxu0  ;;  %v2206_v10 = vmul.f32 0.125, %v3468_v6 }
 0xd23   : > { %v2204_v11 = vmul.f32 0.125, %v2190_v8  ;;  %v3469_v13 = vpop.f32.mrb[26].mxu0 }
 0xd24   : > { %v2193_v14 = vpop.f32.mrb[27].mxu0  ;;  %v2209_v63 = vadd.f32 %v2206_v10, %v4068_v48 }
 0xd25   : > { %v2205_v15 = vmul.f32 0.125, %v2193_v14  ;;  %v2207_v17 = vadd.f32 %v2204_v11, %v4068_v48 }
 0xd26   : > { %v2216_v4 = vsel %vm1188_vm3, %v2209_v63, -inf }
 0xd27   : > { %v2210_v18 = vsel %vm1188_vm3, %v2207_v17, -inf  ;;  %v2208_v61 = vadd.f32 %v2205_v15, %v4068_v48 }
 0xd28   : > { %2211 = vmax.xlane.f32.xlu0 %v2210_v18 }
 0xd29   : > { %v2213_v1 = vsel %vm1188_vm3, %v2208_v61, -inf }
 0xd2a   : > { %2214 = vmax.xlane.f32.xlu1 %v2213_v1 }
 0xd2c   : > { %2217 = vmax.xlane.f32.xlu0 %v2216_v4 }
 0xdb5   : > { %v2212_v19 = vpop.xlane.xlu0 %2211 }
 0xdb6   : > { %v2219_v21 = vsub.f32 %v2207_v17, %v2212_v19 }
 0xdb7   : > { %v2215_v22 = vpop.xlane.xlu1 %2214 }
 0xdb8   : > { %v2222_v23 = vmul.f32 1.442695, %v2219_v21  ;;  %v2220_v24 = vsub.f32 %v2208_v61, %v2215_v22  ;;  %v3620_v21 = vld [vmem:[%s4517_s15 + $0x44] ss:$8 sps:$4 sm:$0xff]   ;;  %v3618_v22 = vld [vmem:[%s4517_s15 + $0x40] ss:$8 sps:$4 sm:$0xff]  }
 0xdb9   : > { %v2218_v26 = vpop.xlane.xlu0 %2217  ;;  %2533 = vmatprep.subr.bf16.mxu1 %v3620_v21 }
 0xdba   : > { %3692 = vpow2.f32 %v2222_v23  ;;  %v2224_v27 = vmul.f32 1.442695, %v2220_v24  ;;  %v2221_v28 = vsub.f32 %v2209_v63, %v2218_v26  ;;  %v3621_v23 = vld [vmem:[%s4517_s15 + $0x50] ss:$8 sps:$4 sm:$0xff]   ;;  %v3626_v24 = vld [vmem:[%s4517_s15 + $0x64] ss:$8 sps:$4 sm:$0xff]  }
 0xdbb   : > { %v3624_v26 = vld [vmem:[%s4517_s15 + $0x60] ss:$8 sps:$4 sm:$0xff]  }
 0xdbc   : > { %3694 = vpow2.f32 %v2224_v27  ;;  %v2226_v29 = vmul.f32 1.442695, %v2221_v28  ;;  %v3627_v27 = vld [vmem:[%s4517_s15 + $0x70] ss:$8 sps:$4 sm:$0xff]   ;;  %v3629_v28 = vld [vmem:[%s4517_s15 + $0x74] ss:$8 sps:$4 sm:$0xff]  }
 0xdbe   : > { %3696 = vpow2.f32 %v2226_v29 }
 0xdc4   : > { %v3693_v48 = vpop.eup %3692 }
 0xdc5   : > { %v2228_v30 = vsel %vm1188_vm3, %v3693_v48, 0.0 }
 0xdc6   : > { %v3695_v31 = vpop.eup %3694  ;;  %2229 = vadd.xlane.f32.xlu1 %v2228_v30 }
 0xdc7   : > { %v2231_v32 = vsel %vm1188_vm3, %v3695_v31, 0.0 }
 0xdc8   : > { %v3697_v33 = vpop.eup %3696  ;;  %2232 = vadd.xlane.f32.xlu0 %v2231_v32 }
 0xdc9   : > { %v2234_v46 = vsel %vm1188_vm3, %v3697_v33, 0.0 }
 0xdca   : > { %2235 = vadd.xlane.f32.xlu1 %v2234_v46 }
 0xe53   : > { %v2230_v37 = vpop.xlane.xlu1 %2229 }
 0xe54   : > { %3698 = vrcp.f32 %v2230_v37 }
 0xe55   : > { %v2233_v38 = vpop.xlane.xlu0 %2232 }
 0xe56   : > { %3700 = vrcp.f32 %v2233_v38 }
 0xe57   : > { %v2236_v39 = vpop.xlane.xlu1 %2235 }
 0xe58   : > { %3702 = vrcp.f32 %v2236_v39  ;;  %v3140_v39 = vld [vmem:[%s4515_s13 + $0x1] ss:$0 sm:$0xff] }
 0xe5e   : > { %v3699_v40 = vpop.eup %3698 }
 0xe5f   : > { %v2240_v44 = vmul.f32 %v3699_v40, %v3693_v48 }
 0xe60   : > { %v3701_v41 = vpop.eup %3700 }
 0xe61   : > { %v2241_v47 = vmul.f32 %v3701_v41, %v3695_v31 }
 0xe62   : > { %v3703_v45 = vpop.eup %3702 }
 0xe63   : > { %v2242_v49 = vmul.f32 %v3703_v45, %v3697_v33  ;;  %v2243_v50 = vpack.c.bf16 %v2241_v47, %v2240_v44  ;;  %v3141_v45 = vld [vmem:[%s4516_s14 + $0x1] ss:$0 sm:$0xff] }
 0xe65   : > { %3474 = vmatprep.mubr.msk.bf16.mxu1 %vm1188_vm3, %v2243_v50  ;;  %v2244_v12 = vpack.c.bf16 %v2242_v49, %v2242_v49 }
 0xe67   : > { %3475 = vmatmul.mubr.msk.bf16.vlgmr.msra.gmra.mrb[32].mxu1 %vm1188_vm3, %v2244_v12 }
 0xe68   : > { %2565 = vmatprep.mubr.bf16.mxu1 %v3789_v7  ;;  %2534 = vmatpush1.bf16.msra.mxu1 %v3618_v22 }
 0xf3a   : > { %v3476_v52 = vpop.f32.mrb[32].mxu1 }
 0xf3b   : > { %v2288_v9 = vpop.f32.mrb[33].mxu1  ;;  %v2303_v58 = vpack.c.bf16 %v3476_v52, %v3476_v52  ;;  %v3630_v52 = vld [vmem:[%s4519_s17 + $0xc0] sm:$0xff]  }
 0xf3c   : > { %v3477_v53 = vpop.f32.mrb[34].mxu1  ;;  %3317 = vmatprep.subr.bf16.mxu0 %v3630_v52 }
 0xf3d   : > { %v2291_v16 = vpop.f32.mrb[35].mxu1  ;;  %v3632_v53 = vld [vmem:[%s4519_s17 + $0xc8] sm:$0xff]  }
 0xf3e   : > { %v2302_v56 = vpack.c.bf16 %v2291_v16, %v2288_v9  ;;  %v3631_v9 = vld [vmem:[%s4519_s17 + $0x80] sm:$0xff]   ;;  %v3633_v16 = vld [vmem:[%s4519_s17 + $0x88] sm:$0xff]  }
 0xf40   : > { %3486 = vmatprep.mubr.msk.bf16.mxu0 %vm728_vm0, %v2302_v56  ;;  %v3635_v56 = vld [vmem:[%s4519_s17 + $0x90] sm:$0xff]  }
 0xf41   : > { %3487 = vmatmul.mubr.msk.bf16.vlgmr.msra.gmra.mrb[28].mxu0 %vm728_vm0, %v2303_v58  ;;  %v3636_v58 = vld [vmem:[%s4519_s17 + $0xd8] sm:$0xff]  }
 0xf42   : > { %3318 = vmatpush3.bf16.msra.mxu0 %v3631_v9 }
 0xf43   : > { %3319 = vmatprep.subr.bf16.mxu0 %v3632_v53 }
 0xf46   : > { %3320 = vmatpush3.bf16.msra.mxu0 %v3633_v16 }
0x1014   : > { %v3488_v60 = vpop.f32.mrb[28].mxu0 }
0x1015   : > { %v2394_v62 = vadd.f32 %v3488_v60, %v3131_v59  ;;  %v2385_v43 = vpop.f32.mrb[29].mxu0  ;;  %v3638_v60 = vld [vmem:[%s4519_s17 + $0xe0] sm:$0xff]  }
0x1016   : > { %v2386_v0 = vadd.f32 %v3131_v59, %v2385_v43  ;;  %v3489_v2 = vpop.f32.mrb[30].mxu0  ;;  %v3640_v43 = vld [vmem:[%s4519_s17 + $0xe8] sm:$0xff]  }
0x1017   : > { %v2388_v3 = vpop.f32.mrb[31].mxu0  ;;  %v2401_v4 = vadd.f32 %v2394_v62, %v4227_v42  ;;  %v3623_v42 = vld [vmem:[%s4517_s15 + $0x54] ss:$8 sps:$4 sm:$0xff]   ;;  %v3639_v62 = vld [vmem:[%s4519_s17 + $0xa0] sm:$0xff]  }
0x1018   : > { %v4332_v5 = vadd.f32 %v2386_v0, %v4217_v25  ;;  %v2389_v6 = vadd.f32 %v3131_v59, %v2388_v3  ;;  %2535 = vmatprep.subr.bf16.mxu1 %v3623_v42  ;;  %v3637_v59 = vld [vmem:[%s4519_s17 + $0x98] sm:$0xff]   ;;  %v3641_v0 = vld [vmem:[%s4519_s17 + $0xa8] sm:$0xff]   ;;  %v3642_v2 = vld [vmem:[%s4519_s17 + $0xf0] sm:$0xff]  }
0x1019   : > { %v2412_v19 = vsel %vm728_vm0, %v2401_v4, 0.0  ;;  %2536 = vmatpush1.bf16.msra.mxu1 %v3621_v23  ;;  %v3643_v3 = vld [vmem:[%s4519_s17 + $0xb0] sm:$0xff]  }
0x101a   : > { %v2406_v8 = vsel %vm728_vm0, %v4332_v5, 0.0  ;;  %v2400_v10 = vadd.f32 %v2389_v6, %v4220_v20  ;;  %2537 = vmatprep.subr.bf16.mxu1 %v3626_v24  ;;  %v3644_v6 = vld [vmem:[%s4519_s17 + $0xf8] sm:$0xff]  }
0x101b   : > { %2407 = vadd.xlane.f32.xlu0 %v2406_v8  ;;  %v3645_v8 = vld [vmem:[%s4519_s17 + $0xb8] sm:$0xff]  }
0x101c   : > { %v2409_v11 = vsel %vm728_vm0, %v2400_v10, 0.0 }
0x101d   : > { %2410 = vadd.xlane.f32.xlu1 %v2409_v11  ;;  %2538 = vmatpush1.bf16.msra.mxu1 %v3624_v26 }
0x101e   : > { %2539 = vmatprep.subr.bf16.mxu1 %v3629_v28 }
0x1021   : > { %2540 = vmatpush1.bf16.msra.mxu1 %v3627_v27 }
0x10a8   : > { %v2408_v13 = vpop.xlane.xlu0 %2407 }
0x10a9   : > { %v2415_v14 = vmul.f32 0.015625, %v2408_v13 }
0x10aa   : > { %v2411_v15 = vpop.xlane.xlu1 %2410 }
0x10ab   : > { %v2418_v17 = vsub.f32 %v4332_v5, %v2415_v14  ;;  %v2416_v18 = vmul.f32 0.015625, %v2411_v15 }
0x10ad   : > { %v2419_v61 = vsub.f32 %v2400_v10, %v2416_v18  ;;  %v2421_v63 = vmul.f32 %v2418_v17, %v2418_v17 }
0x10af   : > { %v2424_v25 = vsel %vm728_vm0, %v2421_v63, 0.0  ;;  %v2422_v1 = vmul.f32 %v2419_v61, %v2419_v61  ;;  %v3150_v63 = vld [vmem:[%s4518_s16 + $0x2] sm:$0x3] }
0x10b0   : > { %2425 = vadd.xlane.f32.xlu0 %v2424_v25  ;;  %v2480_v25 = vrot.slane %v3150_v63, %v1453_v55 }
0x10b1   : > { %v2427_v20 = vsel %vm728_vm0, %v2422_v1, 0.0  ;;  %v2484_v1 = vrot.slane %v3150_v63, %v1457_v57 }
0x10b2   : > { %2428 = vadd.xlane.f32.xlu1 %v2427_v20 }
0x10b4   : > { %2413 = vadd.xlane.f32.xlu0 %v2412_v19 }
0x113d   : > { %v2426_v29 = vpop.xlane.xlu0 %2425 }
0x113e   : > { %v2433_v48 = vmul.f32 0.015625, %v2426_v29 }
0x113f   : > { %v2429_v30 = vpop.xlane.xlu1 %2428 }
0x1140   : > { %v2436_v31 = vadd.f32 1e-05, %v2433_v48  ;;  %v2434_v32 = vmul.f32 0.015625, %v2429_v30 }
0x1141   : > { %v2414_v33 = vpop.xlane.xlu0 %2413 }
0x1142   : > { %3704 = vrsqrt.f32 %v2436_v31  ;;  %v2437_v46 = vadd.f32 1e-05, %v2434_v32  ;;  %v2417_v34 = vmul.f32 0.015625, %v2414_v33 }
0x1144   : > { %3706 = vrsqrt.f32 %v2437_v46  ;;  %v2420_v35 = vsub.f32 %v2401_v4, %v2417_v34 }
0x1146   : > { %v2423_v36 = vmul.f32 %v2420_v35, %v2420_v35 }
0x1148   : > { %v2430_v37 = vsel %vm728_vm0, %v2423_v36, 0.0 }
0x1149   : > { %2431 = vadd.xlane.f32.xlu1 %v2430_v37 }
0x114c   : > { %v3705_v38 = vpop.eup %3704 }
0x114d   : > { %v2442_v40 = vmul.f32 %v3705_v38, %v2418_v17 }
0x114e   : > { %v3707_v41 = vpop.eup %3706 }
0x114f   : > { %v2451_v44 = vmul.f32 %v3140_v39, %v2442_v40  ;;  %v2443_v47 = vmul.f32 %v3707_v41, %v2419_v61 }
0x1151   : > { %v2452_v49 = vmul.f32 %v3140_v39, %v2443_v47  ;;  %v2460_v50 = vadd.f32 %v3141_v45, %v2451_v44 }
0x1153   : > { %v2461_v12 = vadd.f32 %v3141_v45, %v2452_v49 }
0x1155   : > { %v2463_v51 = vpack.c.bf16 %v2461_v12, %v2460_v50 }
0x1157   : > { %3159 = vmatmul.mubr.msk.bf16.vlgmr.msra.gmra.mrb[36].mxu1 %vm728_vm0, %v2463_v51 }
0x1158   : > { %2575 = vmatprep.mubr.bf16.mxu1 %v3789_v7  ;;  %v3634_v7 = vld [vmem:[%s4519_s17 + $0xd0] sm:$0xff]  }
0x1159   : > { %3321 = vmatprep.subr.bf16.mxu0 %v3634_v7 }
0x115a   : > { %3322 = vmatpush3.bf16.msra.mxu0 %v3635_v56 }
0x115b   : > { %3323 = vmatprep.subr.bf16.mxu0 %v3636_v58 }
0x115e   : > { %3324 = vmatpush3.bf16.msra.mxu0 %v3637_v59 }
0x115f   : > { %3325 = vmatprep.subr.bf16.mxu0 %v3638_v60 }
0x1162   : > { %3326 = vmatpush3.bf16.msra.mxu0 %v3639_v62 }
0x1163   : > { %3327 = vmatprep.subr.bf16.mxu0 %v3640_v43 }
0x1166   : > { %3328 = vmatpush3.bf16.msra.mxu0 %v3641_v0 }
0x1167   : > { %3329 = vmatprep.subr.bf16.mxu0 %v3642_v2 }
0x116a   : > { %3330 = vmatpush3.bf16.msra.mxu0 %v3643_v3 }
0x116b   : > { %3331 = vmatprep.subr.bf16.mxu0 %v3644_v6 }
0x116e   : > { %3332 = vmatpush3.bf16.msra.mxu0 %v3645_v8 }
0x11d6   : > { %v2432_v10 = vpop.xlane.xlu1 %2431 }
0x11d7   : > { %v2435_v11 = vmul.f32 0.015625, %v2432_v10 }
0x11d9   : > { %v2438_v13 = vadd.f32 1e-05, %v2435_v11 }
0x11db   : > { %3708 = vrsqrt.f32 %v2438_v13 }
0x11e5   : > { %v3709_v14 = vpop.eup %3708 }
0x11e6   : > { %v2444_v15 = vmul.f32 %v3709_v14, %v2420_v35 }
0x11e8   : > { %v2453_v17 = vmul.f32 %v3140_v39, %v2444_v15 }
0x11ea   : > { %v2462_v18 = vadd.f32 %v3141_v45, %v2453_v17 }
0x11ec   : > { %v2464_v61 = vpack.c.bf16 %v2462_v18, %v2462_v18 }
0x11ee   : > { %3160 = vmatmul.mubr.msk.bf16.gmra.mrb[40].mxu1 %vm728_vm0, %v2464_v61 }
0x122a   : > { %v2567_v4 = vpop.f32.mrb[36].mxu1 }
0x122b   : > { %v2568_v20 = vadd.f32 %v2567_v4, %v2480_v25  ;;  %v2569_v19 = vpop.f32.mrb[37].mxu1 }
0x122c   : > { %v2570_v21 = vadd.f32 %v2569_v19, %v2484_v1  ;;  %v2571_v22 = vpop.f32.mrb[38].mxu1 }
0x122d   : > { %v2584_v42 = vmul.f32 %v2568_v20, %v2568_v20  ;;  %v2572_v23 = vadd.f32 %v2571_v22, %v2480_v25  ;;  %v2573_v24 = vpop.f32.mrb[39].mxu1 }
0x122e   : > { %v2585_v26 = vmul.f32 %v2570_v21, %v2570_v21  ;;  %v2574_v27 = vadd.f32 %v2573_v24, %v2484_v1 }
0x122f   : > { %v2590_v28 = vmul.f32 %v2584_v42, %v2568_v20  ;;  %v2586_v29 = vmul.f32 %v2572_v23, %v2572_v23 }
0x1230   : > { %v2591_v48 = vmul.f32 %v2585_v26, %v2570_v21  ;;  %v2587_v30 = vmul.f32 %v2574_v27, %v2574_v27 }
0x1231   : > { %v2596_v31 = vmul.f32 0.044715, %v2590_v28  ;;  %v2592_v32 = vmul.f32 %v2586_v29, %v2572_v23  ;;  %v3194_v28 = vld [vmem:[%s4520_s18 + $0x1] ss:$0 sm:$0xff] }
0x1232   : > { %v2597_v55 = vmul.f32 0.044715, %v2591_v48  ;;  %v2593_v33 = vmul.f32 %v2587_v30, %v2574_v27 }
0x1233   : > { %v2602_v54 = vadd.f32 %v2596_v31, %v2568_v20  ;;  %v2598_v57 = vmul.f32 0.044715, %v2592_v32 }
0x1234   : > { %v2603_v46 = vadd.f32 %v2597_v55, %v2570_v21  ;;  %v2599_v34 = vmul.f32 0.044715, %v2593_v33 }
0x1235   : > { %v2608_v35 = vmul.f32 0.7978846, %v2602_v54  ;;  %v2604_v36 = vadd.f32 %v2598_v57, %v2572_v23 }
0x1236   : > { %v2609_v37 = vmul.f32 0.7978846, %v2603_v46  ;;  %v2605_v38 = vadd.f32 %v2599_v34, %v2574_v27 }
0x1237   : > { %3710 = vtanh.f32 %v2608_v35  ;;  %v2610_v39 = vmul.f32 0.7978846, %v2604_v36 }
0x1238   : > { %3712 = vtanh.f32 %v2609_v37  ;;  %v2611_v40 = vmul.f32 0.7978846, %v2605_v38 }
0x1239   : > { %3714 = vtanh.f32 %v2610_v39 }
0x123a   : > { %3716 = vtanh.f32 %v2611_v40  ;;  %v3646_v40 = vld [vmem:[%s4523_s21] sm:$0xff]  }
0x1241   : > { %v3711_v41 = vpop.eup %3710 }
0x1242   : > { %v3713_v44 = vpop.eup %3712  ;;  %v2620_v47 = vadd.f32 1.0, %v3711_v41  ;;  %v3790_v41 = vmov 0.0  }
0x1243   : > { %v3715_v45 = vpop.eup %3714  ;;  %v2621_v49 = vadd.f32 1.0, %v3713_v44  ;;  %3490 = vmatprep.subr.bf16.mxu1 %v3790_v41  ;;  %v3648_v44 = vld [vmem:[%s4523_s21 + $0x10] sm:$0xff]   ;;  %3498 = vmatprep.mubr.msk.bf16.mxu1 %vm3791_vm5, %v3790_v41 }
0x1244   : > { %v3717_v50 = vpop.eup %3716  ;;  %v2626_v12 = vmul.f32 0.5, %v2620_v47  ;;  %v2622_v51 = vadd.f32 1.0, %v3715_v45  ;;  %3491 = vmatpush3.bf16.msra.mxu1 %v3646_v40  ;;  %v3649_v47 = vld [vmem:[%s4523_s21 + $0x18] sm:$0xff]  }
0x1245   : > { %v2623_v52 = vadd.f32 1.0, %v3717_v50  ;;  %v2627_v9 = vmul.f32 0.5, %v2621_v49  ;;  %3492 = vmatprep.subr.bf16.mxu1 %v3790_v41 }
0x1246   : > { %v2628_v53 = vmul.f32 0.5, %v2622_v51  ;;  %v2632_v7 = vmul.f32 %v2626_v12, %v2568_v20  ;;  %v2826_v51 = vld [vmem:[%s4521_s19] sm:$0x1] }
0x1247   : > { %v2629_v16 = vmul.f32 0.5, %v2623_v52  ;;  %v2633_v58 = vmul.f32 %v2627_v9, %v2570_v21  ;;  %v2827_v9 = vld [vmem:[%s4522_s20] sm:$0x1] }
0x1248   : > { %v2634_v56 = vmul.f32 %v2628_v53, %v2572_v23 }
0x1249   : > { %v2635_v59 = vmul.f32 %v2629_v16, %v2574_v27 }
0x124a   : > { %v2638_v60 = vpack.c.bf16 %v2634_v56, %v2632_v7 }
0x124b   : > { %v2639_v62 = vpack.c.bf16 %v2635_v59, %v2633_v58 }
0x124d   : > { %2811 = vmatprep.mubr.bf16.mxu0 %v2639_v62 }
0x124e   : > { %2812 = vmatmul.mubr.bf16.vlgmr.msra.gmra.mrb[32].mxu0 %v2638_v60 }
0x12c1   : > { %v2577_v43 = vpop.f32.mrb[40].mxu1 }
0x12c2   : > { %v2578_v0 = vadd.f32 %v2577_v43, %v2480_v25  ;;  %v2579_v2 = vpop.f32.mrb[41].mxu1 }
0x12c3   : > { %v2580_v3 = vadd.f32 %v2579_v2, %v2484_v1  ;;  %v2581_v6 = vpop.f32.mrb[42].mxu1 }
0x12c4   : > { %v2588_v8 = vmul.f32 %v2578_v0, %v2578_v0  ;;  %v2582_v10 = vpop.f32.mrb[43].mxu1 }
0x12c5   : > { %v2589_v11 = vmul.f32 %v2580_v3, %v2580_v3 }
0x12c6   : > { %v2594_v13 = vmul.f32 %v2588_v8, %v2578_v0 }
0x12c7   : > { %v2595_v14 = vmul.f32 %v2589_v11, %v2580_v3 }
0x12c8   : > { %v2600_v15 = vmul.f32 0.044715, %v2594_v13 }
0x12c9   : > { %v2601_v17 = vmul.f32 0.044715, %v2595_v14 }
0x12ca   : > { %v2606_v18 = vadd.f32 %v2600_v15, %v2578_v0 }
0x12cb   : > { %v2607_v61 = vadd.f32 %v2601_v17, %v2580_v3 }
0x12cc   : > { %v2612_v63 = vmul.f32 0.7978846, %v2606_v18 }
0x12cd   : > { %v2613_v4 = vmul.f32 0.7978846, %v2607_v61 }
0x12ce   : > { %3718 = vtanh.f32 %v2612_v63 }
0x12cf   : > { %3720 = vtanh.f32 %v2613_v4 }
0x12d8   : > { %v3719_v20 = vpop.eup %3718 }
0x12d9   : > { %v3721_v19 = vpop.eup %3720  ;;  %v2624_v21 = vadd.f32 1.0, %v3719_v20 }
0x12da   : > { %v2625_v25 = vadd.f32 1.0, %v3721_v19 }
0x12db   : > { %v2630_v22 = vmul.f32 0.5, %v2624_v21 }
0x12dc   : > { %v2631_v1 = vmul.f32 0.5, %v2625_v25 }
0x12dd   : > { %v2636_v42 = vmul.f32 %v2630_v22, %v2578_v0 }
0x12de   : > { %v2637_v23 = vmul.f32 %v2631_v1, %v2580_v3 }
0x12df   : > { %v2640_v26 = vpack.c.bf16 %v2636_v42, %v2636_v42 }
0x12e0   : > { %v2641_v24 = vpack.c.bf16 %v2637_v23, %v2637_v23 }
0x12e2   : > { %2818 = vmatprep.mubr.bf16.mxu0 %v2641_v24 }
0x12e3   : > { %2819 = vmatmul.mubr.bf16.gmra.mrb[36].mxu0 %v2640_v26 }
0x1321   : > { %v3333_v27 = vpop.f32.mrb[32].mxu0 }
0x1322   : > { %v3334_v29 = vpop.f32.mrb[33].mxu0 }
0x1323   : > { %v3335_v48 = vadd.f32 %v3334_v29, %v3333_v27  ;;  %v3336_v30 = vpop.f32.mrb[34].mxu0 }
0x1324   : > { %v3337_v31 = vpop.f32.mrb[35].mxu0 }
0x1325   : > { %v2814_v32 = vadd.f32 %v3335_v48, %v3194_v28 }
0x1327   : > { %v2825_v55 = vadd.f32 %v2814_v32, %v4332_v5  ;;  %v3647_v5 = vld [vmem:[%s4523_s21 + $0x8] sm:$0xff]  }
0x1328   : > { %3493 = vmatpush3.bf16.msra.mxu1 %v3647_v5 }
0x1329   : > { %v2829_v33 = vsel %vm2828_vm4, %v2825_v55, 0.0  ;;  %3494 = vmatprep.subr.bf16.mxu1 %v3790_v41 }
0x132a   : > { %2830 = vadd.xlane.f32.xlu0 %v2829_v33 }
0x132c   : > { %3495 = vmatpush3.bf16.msra.mxu1 %v3648_v44 }
0x132d   : > { %3496 = vmatprep.subr.bf16.mxu1 %v3790_v41 }
0x1330   : > { %3497 = vmatpush3.bf16.msra.mxu1 %v3649_v47 }
0x13b6   : > { %v3339_v54 = vpop.f32.mrb[36].mxu0 }
0x13b7   : > { %v3340_v57 = vpop.f32.mrb[37].mxu0  ;;  %v2831_v46 = vpop.xlane.xlu0 %2830 }
0x13b8   : > { %v2832_v34 = vmul.f32 0.015625, %v2831_v46  ;;  %v3342_v35 = vpop.f32.mrb[38].mxu0 }
0x13b9   : > { %v3343_v36 = vpop.f32.mrb[39].mxu0 }
0x13ba   : > { %v2833_v37 = vsub.f32 %v2825_v55, %v2832_v34 }
0x13bc   : > { %v2834_v38 = vmul.f32 %v2833_v37, %v2833_v37 }
0x13be   : > { %v2835_v39 = vsel %vm2828_vm4, %v2834_v38, 0.0 }
0x13bf   : > { %2836 = vadd.xlane.f32.xlu1 %v2835_v39 }
0x144c   : > { %v2837_v45 = vpop.xlane.xlu1 %2836 }
0x144d   : > { %v2838_v49 = vmul.f32 0.015625, %v2837_v45 }
0x144f   : > { %v2839_v50 = vadd.f32 1e-05, %v2838_v49 }
0x1451   : > { %3722 = vrsqrt.f32 %v2839_v50 }
0x145b   : > { %v3723_v12 = vpop.eup %3722 }
0x145c   : > { %v2841_v52 = vmul.f32 %v3723_v12, %v2833_v37 }
0x145e   : > { %v2842_v53 = vmul.f32 %v2841_v52, %v2826_v51 }
0x1460   : > { %v2843_v16 = vadd.f32 %v2842_v53, %v2827_v9 }
0x1462   : > { %v2844_v7 = vpack.c.bf16 %v2843_v16, %v2843_v16 }
0x1464   : > { %3499 = vmatmul.mubr.msk.bf16.vlgmr.msra.gmra.mrb[44].mxu1 %vm728_vm0, %v2844_v7 }
0x1537   : > { %v2914_v56 = vpop.f32.mrb[44].mxu1 }
0x1538   : > { %2921 = vst.msk [vmem:[%s675_s25] sm:$0x1] %vm2920_vm6, %v2914_v56  ;;  %v3500_v58 = vpop.f32.mrb[45].mxu1 }
0x1539   : > { %v2917_v59 = vpop.f32.mrb[46].mxu1 }
0x153a   : > { %3737 = shalt.err (!%p3734_p3)
}
0x153b   : > { %s3738_s29 = scalar_lea.hbm %s4460_s2, 16  ;;  %s3742_s3 = scalar_lea.hbm %s4571_s26, 32 }
0x153c   : > { %p3739_p4 = scmp.ne.s32.totalorder %s4460_s2, %s3738_s29  ;;  %p3743_p9 = scmp.lt.u32.totalorder %s4460_s2, %s4571_s26 }
0x153d   : > { %p3744_p10 = scmp.lt.u32.totalorder %s3742_s3, %s3738_s29  ;;  %p3746_p12 = scmp.lt.u32.totalorder %s3738_s29, %s4460_s2 }
0x153e   : > { %p3740_p7 = pnand %p3739_p4, %p3946_p5 }
0x153f   : > { %p3745_p11 = por %p3744_p10, %p3743_p9 }
0x1540   : > { %p3741_p8 = pneg %p3740_p7 }
0x1541   : > { %p3747_p13 = por %p3746_p12, %p3745_p11 }
0x1543   : > { %p3748_p0 = pnand %p3747_p13, %p3741_p8 }
0x1545   : > { %3751 = shalt.err (!%p3748_p0)
}
0x1546   : > { %3509 = dma.vmem_to_hbm [thread:$0]  (%p3946_p5), %s4462_s30, 16, %s4460_s2, %s2923_s6   ;;  %v3501_v60 = vpop.f32.mrb[47].mxu1 }
0x1547 PF: > { %s4572_s27 = sld [smem:[#allocation7_spill]]  ;;  %s4573_s1 = sld [smem:[#allocation5_spill]] }
0x154d   : > { %p3515_p1 = scmp.ge.s32.totalorder %s4572_s27, 2  ;;  %s2947_s25 = sand.u32 1, %s4573_s1  }
0x154e   : > { %s2948_s3 = scalar_lea.sflag [#allocation3], %s2947_s25 }
0x154f   : > { %p3512_p2 = pnand %p3515_p1, %p3950_p6 }
0x1551   : > { %3769 = dma.done.wait (!%p3512_p2), %s2948_s3, 16  }
0x1552   : > { %3771 = vsyncadd (!%p3512_p2), %s2948_s3, 4294967280  ;;  %s4575_s30 = sld [smem:[#allocation8_spill]]  ;;  %s4576_s29 = sld [smem:[#allocation6_spill]] }
0x1553   : > { %s4577_s4 = sld [smem:[#allocation9_spill]]  ;;  %s4578_s3 = smov %s3778_s28 }
0x1558   : > { %p32_p3 = scmp.ge.s32.totalorder %s4575_s30, 4   ;;  %s4579_s28 = smov %s4576_s29 }
0x1559   : > { %s4580_s29 = smov %s4577_s4 }
0x155a   :  { %34 = sbr.rel (!%p32_p3) target bundleno = 12 (0xc), region = 159 }
0x1561   :  { %2952 = vsyncpa [#allocation3], 1 }
0x1562   :  { %2954 = vsyncpa [#allocation3 + $0x1], 1 }

</bundles_post_ra>
